<compile_context>
chip_gen: v7x
topology: tpu7x:2x2x1
jax: 0.10.0
libtpu: 0.0.40
codegen_flags: <defaults>
</compile_context>

<pallas_src>
import functools

import jax
import jax.numpy as jnp
from jax import lax
from jax.experimental import pallas as pl
from jax.experimental.pallas import tpu as pltpu

LANES = 128


def _dice_kernel(logits_ref, target_ref,
                 inter_ref, cardp_ref, cardt_ref,
                 acc_i, acc_p, acc_t,
                 *, num_classes, tile_rows, tiles_per_chunk, total_spatial):
    # logits_ref: (1, C, ST, 128) input dtype (upcast in-kernel)
    # target_ref: (1, 1, ST, 128) int8/int32 labels
    # *_ref outs: (1, 1, C, 128)  f32 lane-dense partials per (batch, chunk)
    # acc_*:      (C, 8, 128)     f32 small accumulators (scratch)
    C = num_classes
    ST = tile_rows
    AR = 8
    FOLD = ST // AR
    s = pl.program_id(2)

    @pl.when(s == 0)
    def _init():
        acc_i[...] = jnp.zeros_like(acc_i)
        acc_p[...] = jnp.zeros_like(acc_p)
        acc_t[...] = jnp.zeros_like(acc_t)

    # Logical spatial tile handled by this step.  Chunks that overshoot the
    # real tile count have their DMA clamped onto the last tile by the
    # index_map and end up fully masked here (zero contribution).
    tile_idx = pl.program_id(1) * tiles_per_chunk + s
    # NOTE: int32 index math — fine for 2-D images, would overflow only for
    # volumes approaching 2^31 voxels.
    is_full = (tile_idx + 1) * (ST * LANES) <= total_spatial

    labels = target_ref[0, 0].astype(jnp.int32)           # (ST, 128)

    def fold(x):                                           # (ST,128) -> (8,128)
        if FOLD == 1:
            return x
        return jnp.sum(x.reshape(FOLD, AR, LANES), axis=0)

    def softmax_over_classes(x):                           # (C, ST, 128) f32
        m = jnp.max(x, axis=0, keepdims=True)
        e = jnp.exp(x - m)
        return e * pl.reciprocal(jnp.sum(e, axis=0, keepdims=True))

    def accumulate(masked):
        logits = logits_ref[0].astype(jnp.float32)         # (C, ST, 128)
        if masked:
            rows = lax.broadcasted_iota(jnp.int32, (ST, LANES), 0)
            lanes = lax.broadcasted_iota(jnp.int32, (ST, LANES), 1)
            flat_idx = (tile_idx * ST + rows) * LANES + lanes
            valid = flat_idx < total_spatial
            maskf = valid.astype(jnp.float32)
            # where (not just *mask): stale-VMEM overrun rows may hold NaN/Inf
            # and NaN * 0 == NaN, so they must be replaced, not scaled.
            logits = jnp.where(valid[None], logits, 0.0)
        probs = softmax_over_classes(logits)
        for c in range(C):                                 # unrolled scalar compares
            p_c = probs[c]
            t_c = (labels == c).astype(jnp.float32)
            if masked:
                p_c = p_c * maskf
                t_c = t_c * maskf
            acc_i[c] += fold(p_c * t_c)
            acc_p[c] += fold(p_c)
            acc_t[c] += fold(t_c)

    @pl.when(is_full)
    def _full_tile():
        accumulate(masked=False)

    @pl.when(jnp.logical_not(is_full))
    def _partial_tile():
        accumulate(masked=True)

    @pl.when(s == pl.num_programs(2) - 1)
    def _finalize():
        # Lane-dense (C, 128) partial stores; the final 128-lane sum is JAX glue.
        inter_ref[0, 0] = jnp.sum(acc_i[...], axis=1)
        cardp_ref[0, 0] = jnp.sum(acc_p[...], axis=1)
        cardt_ref[0, 0] = jnp.sum(acc_t[...], axis=1)


def dice_loss(predicts, target, num_classes, *, smooth=1e-10, weight=None,
              idc=None, spatial_chunks=None, max_tile_rows=None):
    """Pallas implementation of DiceLoss.forward."""
    B, C, H, W = predicts.shape
    assert C == num_classes
    S = H * W

    # Keep the input dtype for the HBM->VMEM stream (upcast happens in-kernel).
    logits = predicts.reshape(B, C, S)
    if target.ndim == 4:                   # (B, 1, H, W) -> (B, H, W)
        target = target[:, 0]
    # int8 labels when they fit: labels are 1/(4C) of the logits bytes then.
    # (An ignore label of 255 wraps to -1 and still matches no class, exactly
    #  like the int32 path / the reference one-hot.)
    lbl_dtype = jnp.int8 if num_classes <= 127 else jnp.int32
    tgt = target.reshape(B, S).astype(jnp.int32).astype(lbl_dtype)

    # Pad spatial to a multiple of 8*128 so the row count is sublane-aligned;
    # padded columns are masked in-kernel.
    S_pad = pl.cdiv(S, 8 * LANES) * (8 * LANES)
    if S_pad != S:
        logits = jnp.pad(logits, ((0, 0), (0, 0), (0, S_pad - S)))
        tgt = jnp.pad(tgt, ((0, 0), (0, S_pad - S)))
    SR = S_pad // LANES
    logits = logits.reshape(B, C, SR, LANES)
    tgt = tgt.reshape(B, 1, SR, LANES)

    # ---- generation-aware tile sizing --------------------------------------
    try:
        vmem_cap = int(pltpu.get_tpu_info().vmem_capacity_bytes)
    except Exception:
        vmem_cap = 64 * 1024 * 1024        # conservative (v7x-sized) fallback
    if vmem_cap >= 100 * 1024 * 1024:      # v5e / v6e: 128 MiB physical VMEM
        foot_cap, limit_cap = 64 << 20, 96 << 20
    else:                                  # v7x: 64 MiB per TensorCore
        foot_cap, limit_cap = 20 << 20, 40 << 20

    in_it = jnp.dtype(logits.dtype).itemsize
    lbl_it = jnp.dtype(lbl_dtype).itemsize
    ROWQ = 32                              # lcm of f32/bf16/int8 sublane quanta
    fixed = 3 * C * 8 * LANES * 4          # small accumulators
    per_row = (2 * C * LANES * in_it       # double-buffered logits blocks
               + 2 * LANES * lbl_it        # double-buffered label blocks
               + (4 * C + 10) * LANES * 4)  # f32 softmax intermediates / masks
    rows = max(ROWQ, (foot_cap - fixed) // per_row)
    ST = (rows // ROWQ) * ROWQ             # grow to fill the budget
    if max_tile_rows is not None:
        ST = min(ST, max(ROWQ, ((max_tile_rows + ROWQ - 1) // ROWQ) * ROWQ))
    if ST >= SR:
        ST = SR                            # whole image resident in one tile
    assert ST % 8 == 0
    n_tiles = pl.cdiv(SR, ST)

    # Optional "parallel" spatial-chunk axis: feeds both v7x TensorCores when
    # the batch alone cannot; pure overhead on single-TC chips, so default 1
    # whenever B already provides parallel work.
    if spatial_chunks is None:
        spatial_chunks = 1 if B >= 2 else 2
    NC = max(1, min(int(spatial_chunks), n_tiles))
    SC = pl.cdiv(n_tiles, NC)              # spatial tiles per chunk
    last_tile = n_tiles - 1

    def in_map(b, nc, s):
        # Clamp so overshooting chunks stay in-bounds; masking zeroes their work.
        return (b, 0, jnp.minimum(nc * SC + s, last_tile), 0)

    def out_map(b, nc, s):
        return (b, nc, 0, 0)

    kernel = functools.partial(
        _dice_kernel, num_classes=C, tile_rows=ST,
        tiles_per_chunk=SC, total_spatial=S)

    part = jax.ShapeDtypeStruct((B, NC, C, LANES), jnp.float32)
    footprint = fixed + per_row * ST
    vmem_limit = int(min(limit_cap, max(32 << 20, footprint + (16 << 20))))

    inter, card_p, card_t = pl.pallas_call(
        kernel,
        out_shape=(part, part, part),
        grid_spec=pltpu.PrefetchScalarGridSpec(
            num_scalar_prefetch=0,
            grid=(B, NC, SC),
            in_specs=[
                pl.BlockSpec((1, C, ST, LANES), in_map),
                pl.BlockSpec((1, 1, ST, LANES), in_map),
            ],
            out_specs=(
                pl.BlockSpec((1, 1, C, LANES), out_map),
                pl.BlockSpec((1, 1, C, LANES), out_map),
                pl.BlockSpec((1, 1, C, LANES), out_map),
            ),
            scratch_shapes=[pltpu.VMEM((C, 8, LANES), jnp.float32)] * 3,
        ),
        compiler_params=pltpu.CompilerParams(
            dimension_semantics=("parallel", "parallel", "arbitrary"),
            vmem_limit_bytes=vmem_limit),
    )(logits, tgt)

    # Combine chunk/lane partials + dice formula in (tiny) JAX glue.
    inter = inter.sum(axis=(1, 3))         # (B, C)
    card_p = card_p.sum(axis=(1, 3))
    card_t = card_t.sum(axis=(1, 3))

    if idc is None:
        idc = list(range(num_classes))
    idc = jnp.asarray(idc, dtype=jnp.int32)
    inter = inter[:, idc]
    union = card_p[:, idc] + card_t[:, idc]
    dice = (2.0 * inter + smooth) / (union + smooth)
    loss_per_class = 1.0 - dice            # (B, |idc|)

    if weight is not None:
        w = jnp.asarray(weight, jnp.float32)[idc]
        loss = ((loss_per_class * w[None, :]).sum(axis=1) / w.sum()).mean()
    else:
        loss = loss_per_class.mean()
    return loss
    # TODO(synk): the PyTorch module's `simplex(...)` asserts are trace-time
    # debug checks with no Pallas equivalent; `ignore_index` is unused in the
    # reference forward and therefore not implemented.


def _dice_loss_ref(predicts, target, num_classes, smooth=1e-10,
                   weight=None, idc=None):
    # pure-JAX reference mirroring the PyTorch module
    probs = jax.nn.softmax(predicts.astype(jnp.float32), axis=1)
    onehot = jax.nn.one_hot(target.astype(jnp.int32), num_classes,
                            axis=1, dtype=jnp.float32)
    inter = jnp.einsum('bchw,bchw->bc', probs, onehot)
    union = jnp.einsum('bchw->bc', probs) + jnp.einsum('bchw->bc', onehot)
    if idc is None:
        idc = list(range(num_classes))
    idc = jnp.asarray(idc, jnp.int32)
    dice = (2.0 * inter[:, idc] + smooth) / (union[:, idc] + smooth)
    lpc = 1.0 - dice
    if weight is not None:
        w = jnp.asarray(weight, jnp.float32)[idc]
        return ((lpc * w[None, :]).sum(axis=1) / w.sum()).mean()
    return lpc.mean()


if __name__ == "__main__":
    key = jax.random.PRNGKey(0)
    k1, k2, k3, k4 = jax.random.split(key, 4)

    # Case 1: canonical small shape, f32, unweighted.
    B, C, H, W = 2, 4, 16, 16
    predicts = jax.random.normal(k1, (B, C, H, W), dtype=jnp.float32)
    target = jax.random.randint(k2, (B, H, W), 0, C, dtype=jnp.int32)
    loss = jax.block_until_ready(dice_loss(predicts, target, num_classes=C))
    ref = _dice_loss_ref(predicts, target, C)
    assert jnp.allclose(loss, ref, rtol=1e-5, atol=1e-5), (loss, ref)

    # Case 2: odd spatial size -> multi-tile grid with a partial tile, chunk
    # overshoot clamping, (B,1,H,W) target, class weights and idc subset.
    B2, C2, H2, W2 = 1, 3, 107, 109
    x2 = jax.random.normal(k3, (B2, C2, H2, W2), dtype=jnp.float32)
    y2 = jax.random.randint(k4, (B2, 1, H2, W2), 0, C2, dtype=jnp.int32)
    w2 = [0.2, 0.5, 0.3]
    loss2 = jax.block_until_ready(
        dice_loss(x2, y2, num_classes=C2, weight=w2, idc=[0, 2],
                  spatial_chunks=2, max_tile_rows=32))
    ref2 = _dice_loss_ref(x2, y2[:, 0], C2, weight=w2, idc=[0, 2])
    assert jnp.allclose(loss2, ref2, rtol=1e-5, atol=1e-5), (loss2, ref2)

    print("KERNEL_OK")
</pallas_src>

<mosaic_0001>
module attributes {stable_mosaic.version = 11 : i64} {
  func.func @_dice_kernel(%arg0: i32, %arg1: i32, %arg2: i32, %arg3: memref<1x4x8x128xf32, #tpu.memory_space<vmem>>, %arg4: memref<1x1x8x128xi8, #tpu.memory_space<vmem>>, %arg5: memref<1x1x4x128xf32, #tpu.memory_space<vmem>>, %arg6: memref<1x1x4x128xf32, #tpu.memory_space<vmem>>, %arg7: memref<1x1x4x128xf32, #tpu.memory_space<vmem>>, %arg8: memref<4x8x128xf32, #tpu.memory_space<vmem>>, %arg9: memref<4x8x128xf32, #tpu.memory_space<vmem>>, %arg10: memref<4x8x128xf32, #tpu.memory_space<vmem>>) attributes {dimension_semantics = [#tpu.dimension_semantics<parallel>, #tpu.dimension_semantics<parallel>, #tpu.dimension_semantics<arbitrary>], iteration_bounds = array<i64: 2, 1, 1>, scalar_prefetch = 0 : i64, scratch_operands = 3 : i64, tpu.core_type = #tpu.core_type<tc>, window_params = [{transform_indices = @transform_0, window_bounds = array<i64: 1, 4, 8, 128>}, {transform_indices = @transform_1, window_bounds = array<i64: 1, 1, 8, 128>}, {transform_indices = @transform_2, window_bounds = array<i64: 1, 1, 4, 128>}, {transform_indices = @transform_3, window_bounds = array<i64: 1, 1, 4, 128>}, {transform_indices = @transform_4, window_bounds = array<i64: 1, 1, 4, 128>}]} {
    %c0_i32 = arith.constant 0 : i32
    %0 = arith.cmpi eq, %arg2, %c0_i32 : i32
    %1 = arith.extui %0 : i1 to i32
    %c0_i32_0 = arith.constant 0 : i32
    %2 = arith.cmpi ne, %1, %c0_i32_0 : i32
    scf.if %2 {
      %cst = arith.constant 0.000000e+00 : f32
      %19 = vector.broadcast %cst : f32 to vector<4x8x128xf32>
      %c0_9 = arith.constant 0 : index
      %c0_10 = arith.constant 0 : index
      %c0_11 = arith.constant 0 : index
      %20 = vector.load %arg8[%c0_9, %c0_10, %c0_11] : memref<4x8x128xf32, #tpu.memory_space<vmem>>, vector<4x8x128xf32>
      tpu.vector_store %arg8[%c0_9, %c0_10, %c0_11], %19 {strides = array<i32>} : memref<4x8x128xf32, #tpu.memory_space<vmem>>, vector<4x8x128xf32>,
      %cst_12 = arith.constant 0.000000e+00 : f32
      %21 = vector.broadcast %cst_12 : f32 to vector<4x8x128xf32>
      %c0_13 = arith.constant 0 : index
      %c0_14 = arith.constant 0 : index
      %c0_15 = arith.constant 0 : index
      %22 = vector.load %arg9[%c0_13, %c0_14, %c0_15] : memref<4x8x128xf32, #tpu.memory_space<vmem>>, vector<4x8x128xf32>
      tpu.vector_store %arg9[%c0_13, %c0_14, %c0_15], %21 {strides = array<i32>} : memref<4x8x128xf32, #tpu.memory_space<vmem>>, vector<4x8x128xf32>,
      %cst_16 = arith.constant 0.000000e+00 : f32
      %23 = vector.broadcast %cst_16 : f32 to vector<4x8x128xf32>
      %c0_17 = arith.constant 0 : index
      %c0_18 = arith.constant 0 : index
      %c0_19 = arith.constant 0 : index
      %24 = vector.load %arg10[%c0_17, %c0_18, %c0_19] : memref<4x8x128xf32, #tpu.memory_space<vmem>>, vector<4x8x128xf32>
      tpu.vector_store %arg10[%c0_17, %c0_18, %c0_19], %23 {strides = array<i32>} : memref<4x8x128xf32, #tpu.memory_space<vmem>>, vector<4x8x128xf32>,
    } else {
    }
    %c1_i32 = arith.constant 1 : i32
    %3 = arith.muli %arg1, %c1_i32 : i32
    %4 = arith.addi %3, %arg2 : i32
    %c1_i32_1 = arith.constant 1 : i32
    %5 = arith.addi %4, %c1_i32_1 : i32
    %c1024_i32 = arith.constant 1024 : i32
    %6 = arith.muli %5, %c1024_i32 : i32
    %c256_i32 = arith.constant 256 : i32
    %7 = arith.cmpi sle, %6, %c256_i32 : i32
    %c0 = arith.constant 0 : index
    %c0_2 = arith.constant 0 : index
    %c0_3 = arith.constant 0 : index
    %c0_4 = arith.constant 0 : index
    %8 = vector.load %arg4[%c0, %c0_2, %c0_3, %c0_4] : memref<1x1x8x128xi8, #tpu.memory_space<vmem>>, vector<1x1x8x128xi8>
    %9 = vector.shape_cast %8 : vector<1x1x8x128xi8> to vector<8x128xi8>
    %10 = arith.extsi %9 : vector<8x128xi8> to vector<8x128xi32>
    %11 = arith.extui %7 : i1 to i32
    %c0_i32_5 = arith.constant 0 : i32
    %12 = arith.cmpi ne, %11, %c0_i32_5 : i32
    scf.if %12 {
      %c0_9 = arith.constant 0 : index
      %c0_10 = arith.constant 0 : index
      %c0_11 = arith.constant 0 : index
      %c0_12 = arith.constant 0 : index
      %19 = vector.load %arg3[%c0_9, %c0_10, %c0_11, %c0_12] : memref<1x4x8x128xf32, #tpu.memory_space<vmem>>, vector<1x4x8x128xf32>
      %20 = vector.shape_cast %19 : vector<1x4x8x128xf32> to vector<4x8x128xf32>
      %cst = arith.constant dense<0xFF800000> : vector<8x128xf32>
      %21 = vector.multi_reduction <maximumf>, %20, %cst [0] : vector<4x8x128xf32> to vector<8x128xf32>
      %22 = vector.shape_cast %21 : vector<8x128xf32> to vector<1x8x128xf32>
      %23 = vector.broadcast %22 : vector<1x8x128xf32> to vector<4x8x128xf32>
      %24 = arith.subf %20, %23 : vector<4x8x128xf32>
      %25 = math.exp %24 : vector<4x8x128xf32>
      %cst_13 = arith.constant dense<0.000000e+00> : vector<8x128xf32>
      %26 = vector.multi_reduction <add>, %25, %cst_13 [0] : vector<4x8x128xf32> to vector<8x128xf32>
      %27 = vector.shape_cast %26 : vector<8x128xf32> to vector<1x8x128xf32>
      %28 = tpu.reciprocal %27 : vector<1x8x128xf32> -> vector<1x8x128xf32>
      %29 = vector.broadcast %28 : vector<1x8x128xf32> to vector<4x8x128xf32>
      %30 = arith.mulf %25, %29 : vector<4x8x128xf32>
      %31 = vector.extract_strided_slice %30 {offsets = [0, 0, 0], sizes = [1, 8, 128], strides = [1, 1, 1]} : vector<4x8x128xf32> to vector<1x8x128xf32>
      %32 = vector.shape_cast %31 : vector<1x8x128xf32> to vector<8x128xf32>
      %c0_i32_14 = arith.constant 0 : i32
      %33 = vector.broadcast %c0_i32_14 : i32 to vector<8x128xi32>
      %34 = arith.cmpi eq, %10, %33 : vector<8x128xi32>
      %35 = arith.extui %34 : vector<8x128xi1> to vector<8x128xi32>
      %36 = arith.sitofp %35 : vector<8x128xi32> to vector<8x128xf32>
      %c0_15 = arith.constant 0 : index
      %c0_16 = arith.constant 0 : index
      %c0_17 = arith.constant 0 : index
      %37 = vector.load %arg8[%c0_15, %c0_16, %c0_17] : memref<4x8x128xf32, #tpu.memory_space<vmem>>, vector<1x8x128xf32>
      %38 = vector.shape_cast %37 : vector<1x8x128xf32> to vector<8x128xf32>
      %39 = arith.mulf %32, %36 : vector<8x128xf32>
      %40 = arith.addf %38, %39 : vector<8x128xf32>
      %c0_18 = arith.constant 0 : index
      %c0_19 = arith.constant 0 : index
      %c0_20 = arith.constant 0 : index
      %41 = vector.load %arg8[%c0_18, %c0_19, %c0_20] : memref<4x8x128xf32, #tpu.memory_space<vmem>>, vector<1x8x128xf32>
      %42 = vector.shape_cast %41 : vector<1x8x128xf32> to vector<8x128xf32>
      %43 = vector.shape_cast %40 : vector<8x128xf32> to vector<1x8x128xf32>
      tpu.vector_store %arg8[%c0_18, %c0_19, %c0_20], %43 {strides = array<i32>} : memref<4x8x128xf32, #tpu.memory_space<vmem>>, vector<1x8x128xf32>,
      %c0_21 = arith.constant 0 : index
      %c0_22 = arith.constant 0 : index
      %c0_23 = arith.constant 0 : index
      %44 = vector.load %arg9[%c0_21, %c0_22, %c0_23] : memref<4x8x128xf32, #tpu.memory_space<vmem>>, vector<1x8x128xf32>
      %45 = vector.shape_cast %44 : vector<1x8x128xf32> to vector<8x128xf32>
      %46 = arith.addf %45, %32 : vector<8x128xf32>
      %c0_24 = arith.constant 0 : index
      %c0_25 = arith.constant 0 : index
      %c0_26 = arith.constant 0 : index
      %47 = vector.load %arg9[%c0_24, %c0_25, %c0_26] : memref<4x8x128xf32, #tpu.memory_space<vmem>>, vector<1x8x128xf32>
      %48 = vector.shape_cast %47 : vector<1x8x128xf32> to vector<8x128xf32>
      %49 = vector.shape_cast %46 : vector<8x128xf32> to vector<1x8x128xf32>
      tpu.vector_store %arg9[%c0_24, %c0_25, %c0_26], %49 {strides = array<i32>} : memref<4x8x128xf32, #tpu.memory_space<vmem>>, vector<1x8x128xf32>,
      %c0_27 = arith.constant 0 : index
      %c0_28 = arith.constant 0 : index
      %c0_29 = arith.constant 0 : index
      %50 = vector.load %arg10[%c0_27, %c0_28, %c0_29] : memref<4x8x128xf32, #tpu.memory_space<vmem>>, vector<1x8x128xf32>
      %51 = vector.shape_cast %50 : vector<1x8x128xf32> to vector<8x128xf32>
      %52 = arith.addf %51, %36 : vector<8x128xf32>
      %c0_30 = arith.constant 0 : index
      %c0_31 = arith.constant 0 : index
      %c0_32 = arith.constant 0 : index
      %53 = vector.load %arg10[%c0_30, %c0_31, %c0_32] : memref<4x8x128xf32, #tpu.memory_space<vmem>>, vector<1x8x128xf32>
      %54 = vector.shape_cast %53 : vector<1x8x128xf32> to vector<8x128xf32>
      %55 = vector.shape_cast %52 : vector<8x128xf32> to vector<1x8x128xf32>
      tpu.vector_store %arg10[%c0_30, %c0_31, %c0_32], %55 {strides = array<i32>} : memref<4x8x128xf32, #tpu.memory_space<vmem>>, vector<1x8x128xf32>,
      %56 = vector.extract_strided_slice %30 {offsets = [1, 0, 0], sizes = [1, 8, 128], strides = [1, 1, 1]} : vector<4x8x128xf32> to vector<1x8x128xf32>
      %57 = vector.shape_cast %56 : vector<1x8x128xf32> to vector<8x128xf32>
      %c1_i32_33 = arith.constant 1 : i32
      %58 = vector.broadcast %c1_i32_33 : i32 to vector<8x128xi32>
      %59 = arith.cmpi eq, %10, %58 : vector<8x128xi32>
      %60 = arith.extui %59 : vector<8x128xi1> to vector<8x128xi32>
      %61 = arith.sitofp %60 : vector<8x128xi32> to vector<8x128xf32>
      %c1 = arith.constant 1 : index
      %c0_34 = arith.constant 0 : index
      %c0_35 = arith.constant 0 : index
      %62 = vector.load %arg8[%c1, %c0_34, %c0_35] : memref<4x8x128xf32, #tpu.memory_space<vmem>>, vector<1x8x128xf32>
      %63 = vector.shape_cast %62 : vector<1x8x128xf32> to vector<8x128xf32>
      %64 = arith.mulf %57, %61 : vector<8x128xf32>
      %65 = arith.addf %63, %64 : vector<8x128xf32>
      %c1_36 = arith.constant 1 : index
      %c0_37 = arith.constant 0 : index
      %c0_38 = arith.constant 0 : index
      %66 = vector.load %arg8[%c1_36, %c0_37, %c0_38] : memref<4x8x128xf32, #tpu.memory_space<vmem>>, vector<1x8x128xf32>
      %67 = vector.shape_cast %66 : vector<1x8x128xf32> to vector<8x128xf32>
      %68 = vector.shape_cast %65 : vector<8x128xf32> to vector<1x8x128xf32>
      tpu.vector_store %arg8[%c1_36, %c0_37, %c0_38], %68 {strides = array<i32>} : memref<4x8x128xf32, #tpu.memory_space<vmem>>, vector<1x8x128xf32>,
      %c1_39 = arith.constant 1 : index
      %c0_40 = arith.constant 0 : index
      %c0_41 = arith.constant 0 : index
      %69 = vector.load %arg9[%c1_39, %c0_40, %c0_41] : memref<4x8x128xf32, #tpu.memory_space<vmem>>, vector<1x8x128xf32>
      %70 = vector.shape_cast %69 : vector<1x8x128xf32> to vector<8x128xf32>
      %71 = arith.addf %70, %57 : vector<8x128xf32>
      %c1_42 = arith.constant 1 : index
      %c0_43 = arith.constant 0 : index
      %c0_44 = arith.constant 0 : index
      %72 = vector.load %arg9[%c1_42, %c0_43, %c0_44] : memref<4x8x128xf32, #tpu.memory_space<vmem>>, vector<1x8x128xf32>
      %73 = vector.shape_cast %72 : vector<1x8x128xf32> to vector<8x128xf32>
      %74 = vector.shape_cast %71 : vector<8x128xf32> to vector<1x8x128xf32>
      tpu.vector_store %arg9[%c1_42, %c0_43, %c0_44], %74 {strides = array<i32>} : memref<4x8x128xf32, #tpu.memory_space<vmem>>, vector<1x8x128xf32>,
      %c1_45 = arith.constant 1 : index
      %c0_46 = arith.constant 0 : index
      %c0_47 = arith.constant 0 : index
      %75 = vector.load %arg10[%c1_45, %c0_46, %c0_47] : memref<4x8x128xf32, #tpu.memory_space<vmem>>, vector<1x8x128xf32>
      %76 = vector.shape_cast %75 : vector<1x8x128xf32> to vector<8x128xf32>
      %77 = arith.addf %76, %61 : vector<8x128xf32>
      %c1_48 = arith.constant 1 : index
      %c0_49 = arith.constant 0 : index
      %c0_50 = arith.constant 0 : index
      %78 = vector.load %arg10[%c1_48, %c0_49, %c0_50] : memref<4x8x128xf32, #tpu.memory_space<vmem>>, vector<1x8x128xf32>
      %79 = vector.shape_cast %78 : vector<1x8x128xf32> to vector<8x128xf32>
      %80 = vector.shape_cast %77 : vector<8x128xf32> to vector<1x8x128xf32>
      tpu.vector_store %arg10[%c1_48, %c0_49, %c0_50], %80 {strides = array<i32>} : memref<4x8x128xf32, #tpu.memory_space<vmem>>, vector<1x8x128xf32>,
      %81 = vector.extract_strided_slice %30 {offsets = [2, 0, 0], sizes = [1, 8, 128], strides = [1, 1, 1]} : vector<4x8x128xf32> to vector<1x8x128xf32>
      %82 = vector.shape_cast %81 : vector<1x8x128xf32> to vector<8x128xf32>
      %c2_i32 = arith.constant 2 : i32
      %83 = vector.broadcast %c2_i32 : i32 to vector<8x128xi32>
      %84 = arith.cmpi eq, %10, %83 : vector<8x128xi32>
      %85 = arith.extui %84 : vector<8x128xi1> to vector<8x128xi32>
      %86 = arith.sitofp %85 : vector<8x128xi32> to vector<8x128xf32>
      %c2 = arith.constant 2 : index
      %c0_51 = arith.constant 0 : index
      %c0_52 = arith.constant 0 : index
      %87 = vector.load %arg8[%c2, %c0_51, %c0_52] : memref<4x8x128xf32, #tpu.memory_space<vmem>>, vector<1x8x128xf32>
      %88 = vector.shape_cast %87 : vector<1x8x128xf32> to vector<8x128xf32>
      %89 = arith.mulf %82, %86 : vector<8x128xf32>
      %90 = arith.addf %88, %89 : vector<8x128xf32>
      %c2_53 = arith.constant 2 : index
      %c0_54 = arith.constant 0 : index
      %c0_55 = arith.constant 0 : index
      %91 = vector.load %arg8[%c2_53, %c0_54, %c0_55] : memref<4x8x128xf32, #tpu.memory_space<vmem>>, vector<1x8x128xf32>
      %92 = vector.shape_cast %91 : vector<1x8x128xf32> to vector<8x128xf32>
      %93 = vector.shape_cast %90 : vector<8x128xf32> to vector<1x8x128xf32>
      tpu.vector_store %arg8[%c2_53, %c0_54, %c0_55], %93 {strides = array<i32>} : memref<4x8x128xf32, #tpu.memory_space<vmem>>, vector<1x8x128xf32>,
      %c2_56 = arith.constant 2 : index
      %c0_57 = arith.constant 0 : index
      %c0_58 = arith.constant 0 : index
      %94 = vector.load %arg9[%c2_56, %c0_57, %c0_58] : memref<4x8x128xf32, #tpu.memory_space<vmem>>, vector<1x8x128xf32>
      %95 = vector.shape_cast %94 : vector<1x8x128xf32> to vector<8x128xf32>
      %96 = arith.addf %95, %82 : vector<8x128xf32>
      %c2_59 = arith.constant 2 : index
      %c0_60 = arith.constant 0 : index
      %c0_61 = arith.constant 0 : index
      %97 = vector.load %arg9[%c2_59, %c0_60, %c0_61] : memref<4x8x128xf32, #tpu.memory_space<vmem>>, vector<1x8x128xf32>
      %98 = vector.shape_cast %97 : vector<1x8x128xf32> to vector<8x128xf32>
      %99 = vector.shape_cast %96 : vector<8x128xf32> to vector<1x8x128xf32>
      tpu.vector_store %arg9[%c2_59, %c0_60, %c0_61], %99 {strides = array<i32>} : memref<4x8x128xf32, #tpu.memory_space<vmem>>, vector<1x8x128xf32>,
      %c2_62 = arith.constant 2 : index
      %c0_63 = arith.constant 0 : index
      %c0_64 = arith.constant 0 : index
      %100 = vector.load %arg10[%c2_62, %c0_63, %c0_64] : memref<4x8x128xf32, #tpu.memory_space<vmem>>, vector<1x8x128xf32>
      %101 = vector.shape_cast %100 : vector<1x8x128xf32> to vector<8x128xf32>
      %102 = arith.addf %101, %86 : vector<8x128xf32>
      %c2_65 = arith.constant 2 : index
      %c0_66 = arith.constant 0 : index
      %c0_67 = arith.constant 0 : index
      %103 = vector.load %arg10[%c2_65, %c0_66, %c0_67] : memref<4x8x128xf32, #tpu.memory_space<vmem>>, vector<1x8x128xf32>
      %104 = vector.shape_cast %103 : vector<1x8x128xf32> to vector<8x128xf32>
      %105 = vector.shape_cast %102 : vector<8x128xf32> to vector<1x8x128xf32>
      tpu.vector_store %arg10[%c2_65, %c0_66, %c0_67], %105 {strides = array<i32>} : memref<4x8x128xf32, #tpu.memory_space<vmem>>, vector<1x8x128xf32>,
      %106 = vector.extract_strided_slice %30 {offsets = [3, 0, 0], sizes = [1, 8, 128], strides = [1, 1, 1]} : vector<4x8x128xf32> to vector<1x8x128xf32>
      %107 = vector.shape_cast %106 : vector<1x8x128xf32> to vector<8x128xf32>
      %c3_i32 = arith.constant 3 : i32
      %108 = vector.broadcast %c3_i32 : i32 to vector<8x128xi32>
      %109 = arith.cmpi eq, %10, %108 : vector<8x128xi32>
      %110 = arith.extui %109 : vector<8x128xi1> to vector<8x128xi32>
      %111 = arith.sitofp %110 : vector<8x128xi32> to vector<8x128xf32>
      %c3 = arith.constant 3 : index
      %c0_68 = arith.constant 0 : index
      %c0_69 = arith.constant 0 : index
      %112 = vector.load %arg8[%c3, %c0_68, %c0_69] : memref<4x8x128xf32, #tpu.memory_space<vmem>>, vector<1x8x128xf32>
      %113 = vector.shape_cast %112 : vector<1x8x128xf32> to vector<8x128xf32>
      %114 = arith.mulf %107, %111 : vector<8x128xf32>
      %115 = arith.addf %113, %114 : vector<8x128xf32>
      %c3_70 = arith.constant 3 : index
      %c0_71 = arith.constant 0 : index
      %c0_72 = arith.constant 0 : index
      %116 = vector.load %arg8[%c3_70, %c0_71, %c0_72] : memref<4x8x128xf32, #tpu.memory_space<vmem>>, vector<1x8x128xf32>
      %117 = vector.shape_cast %116 : vector<1x8x128xf32> to vector<8x128xf32>
      %118 = vector.shape_cast %115 : vector<8x128xf32> to vector<1x8x128xf32>
      tpu.vector_store %arg8[%c3_70, %c0_71, %c0_72], %118 {strides = array<i32>} : memref<4x8x128xf32, #tpu.memory_space<vmem>>, vector<1x8x128xf32>,
      %c3_73 = arith.constant 3 : index
      %c0_74 = arith.constant 0 : index
      %c0_75 = arith.constant 0 : index
      %119 = vector.load %arg9[%c3_73, %c0_74, %c0_75] : memref<4x8x128xf32, #tpu.memory_space<vmem>>, vector<1x8x128xf32>
      %120 = vector.shape_cast %119 : vector<1x8x128xf32> to vector<8x128xf32>
      %121 = arith.addf %120, %107 : vector<8x128xf32>
      %c3_76 = arith.constant 3 : index
      %c0_77 = arith.constant 0 : index
      %c0_78 = arith.constant 0 : index
      %122 = vector.load %arg9[%c3_76, %c0_77, %c0_78] : memref<4x8x128xf32, #tpu.memory_space<vmem>>, vector<1x8x128xf32>
      %123 = vector.shape_cast %122 : vector<1x8x128xf32> to vector<8x128xf32>
      %124 = vector.shape_cast %121 : vector<8x128xf32> to vector<1x8x128xf32>
      tpu.vector_store %arg9[%c3_76, %c0_77, %c0_78], %124 {strides = array<i32>} : memref<4x8x128xf32, #tpu.memory_space<vmem>>, vector<1x8x128xf32>,
      %c3_79 = arith.constant 3 : index
      %c0_80 = arith.constant 0 : index
      %c0_81 = arith.constant 0 : index
      %125 = vector.load %arg10[%c3_79, %c0_80, %c0_81] : memref<4x8x128xf32, #tpu.memory_space<vmem>>, vector<1x8x128xf32>
      %126 = vector.shape_cast %125 : vector<1x8x128xf32> to vector<8x128xf32>
      %127 = arith.addf %126, %111 : vector<8x128xf32>
      %c3_82 = arith.constant 3 : index
      %c0_83 = arith.constant 0 : index
      %c0_84 = arith.constant 0 : index
      %128 = vector.load %arg10[%c3_82, %c0_83, %c0_84] : memref<4x8x128xf32, #tpu.memory_space<vmem>>, vector<1x8x128xf32>
      %129 = vector.shape_cast %128 : vector<1x8x128xf32> to vector<8x128xf32>
      %130 = vector.shape_cast %127 : vector<8x128xf32> to vector<1x8x128xf32>
      tpu.vector_store %arg10[%c3_82, %c0_83, %c0_84], %130 {strides = array<i32>} : memref<4x8x128xf32, #tpu.memory_space<vmem>>, vector<1x8x128xf32>,
    } else {
    }
    %true = arith.constant true
    %13 = arith.xori %7, %true : i1
    %14 = arith.extui %13 : i1 to i32
    %c0_i32_6 = arith.constant 0 : i32
    %15 = arith.cmpi ne, %14, %c0_i32_6 : i32
    scf.if %15 {
      %c0_9 = arith.constant 0 : index
      %c0_10 = arith.constant 0 : index
      %c0_11 = arith.constant 0 : index
      %c0_12 = arith.constant 0 : index
      %19 = vector.load %arg3[%c0_9, %c0_10, %c0_11, %c0_12] : memref<1x4x8x128xf32, #tpu.memory_space<vmem>>, vector<1x4x8x128xf32>
      %20 = vector.shape_cast %19 : vector<1x4x8x128xf32> to vector<4x8x128xf32>
      %21 = tpu.iota {dimensions = array<i32: 0>} : vector<8x128xi32>
      %22 = tpu.iota {dimensions = array<i32: 1>} : vector<8x128xi32>
      %c8_i32 = arith.constant 8 : i32
      %23 = arith.muli %4, %c8_i32 : i32
      %24 = vector.broadcast %23 : i32 to vector<8x128xi32>
      %25 = arith.addi %24, %21 : vector<8x128xi32>
      %c128_i32 = arith.constant 128 : i32
      %26 = vector.broadcast %c128_i32 : i32 to vector<8x128xi32>
      %27 = arith.muli %25, %26 : vector<8x128xi32>
      %28 = arith.addi %27, %22 : vector<8x128xi32>
      %c256_i32_13 = arith.constant 256 : i32
      %29 = vector.broadcast %c256_i32_13 : i32 to vector<8x128xi32>
      %30 = arith.cmpi slt, %28, %29 : vector<8x128xi32>
      %31 = arith.extui %30 : vector<8x128xi1> to vector<8x128xi32>
      %32 = arith.sitofp %31 : vector<8x128xi32> to vector<8x128xf32>
      %33 = vector.shape_cast %30 : vector<8x128xi1> to vector<1x8x128xi1>
      %cst = arith.constant 0.000000e+00 : f32
      %34 = vector.shape_cast %33 : vector<1x8x128xi1> to vector<1x8x128xi1>
      %35 = vector.broadcast %34 : vector<1x8x128xi1> to vector<4x8x128xi1>
      %36 = vector.broadcast %cst : f32 to vector<4x8x128xf32>
      %37 = arith.select %35, %20, %36 : vector<4x8x128xi1>, vector<4x8x128xf32>
      %cst_14 = arith.constant dense<0xFF800000> : vector<8x128xf32>
      %38 = vector.multi_reduction <maximumf>, %37, %cst_14 [0] : vector<4x8x128xf32> to vector<8x128xf32>
      %39 = vector.shape_cast %38 : vector<8x128xf32> to vector<1x8x128xf32>
      %40 = vector.broadcast %39 : vector<1x8x128xf32> to vector<4x8x128xf32>
      %41 = arith.subf %37, %40 : vector<4x8x128xf32>
      %42 = math.exp %41 : vector<4x8x128xf32>
      %cst_15 = arith.constant dense<0.000000e+00> : vector<8x128xf32>
      %43 = vector.multi_reduction <add>, %42, %cst_15 [0] : vector<4x8x128xf32> to vector<8x128xf32>
      %44 = vector.shape_cast %43 : vector<8x128xf32> to vector<1x8x128xf32>
      %45 = tpu.reciprocal %44 : vector<1x8x128xf32> -> vector<1x8x128xf32>
      %46 = vector.broadcast %45 : vector<1x8x128xf32> to vector<4x8x128xf32>
      %47 = arith.mulf %42, %46 : vector<4x8x128xf32>
      %48 = vector.extract_strided_slice %47 {offsets = [0, 0, 0], sizes = [1, 8, 128], strides = [1, 1, 1]} : vector<4x8x128xf32> to vector<1x8x128xf32>
      %49 = vector.shape_cast %48 : vector<1x8x128xf32> to vector<8x128xf32>
      %c0_i32_16 = arith.constant 0 : i32
      %50 = vector.broadcast %c0_i32_16 : i32 to vector<8x128xi32>
      %51 = arith.cmpi eq, %10, %50 : vector<8x128xi32>
      %52 = arith.extui %51 : vector<8x128xi1> to vector<8x128xi32>
      %53 = arith.sitofp %52 : vector<8x128xi32> to vector<8x128xf32>
      %54 = arith.mulf %49, %32 : vector<8x128xf32>
      %55 = arith.mulf %53, %32 : vector<8x128xf32>
      %c0_17 = arith.constant 0 : index
      %c0_18 = arith.constant 0 : index
      %c0_19 = arith.constant 0 : index
      %56 = vector.load %arg8[%c0_17, %c0_18, %c0_19] : memref<4x8x128xf32, #tpu.memory_space<vmem>>, vector<1x8x128xf32>
      %57 = vector.shape_cast %56 : vector<1x8x128xf32> to vector<8x128xf32>
      %58 = arith.mulf %54, %55 : vector<8x128xf32>
      %59 = arith.addf %57, %58 : vector<8x128xf32>
      %c0_20 = arith.constant 0 : index
      %c0_21 = arith.constant 0 : index
      %c0_22 = arith.constant 0 : index
      %60 = vector.load %arg8[%c0_20, %c0_21, %c0_22] : memref<4x8x128xf32, #tpu.memory_space<vmem>>, vector<1x8x128xf32>
      %61 = vector.shape_cast %60 : vector<1x8x128xf32> to vector<8x128xf32>
      %62 = vector.shape_cast %59 : vector<8x128xf32> to vector<1x8x128xf32>
      tpu.vector_store %arg8[%c0_20, %c0_21, %c0_22], %62 {strides = array<i32>} : memref<4x8x128xf32, #tpu.memory_space<vmem>>, vector<1x8x128xf32>,
      %c0_23 = arith.constant 0 : index
      %c0_24 = arith.constant 0 : index
      %c0_25 = arith.constant 0 : index
      %63 = vector.load %arg9[%c0_23, %c0_24, %c0_25] : memref<4x8x128xf32, #tpu.memory_space<vmem>>, vector<1x8x128xf32>
      %64 = vector.shape_cast %63 : vector<1x8x128xf32> to vector<8x128xf32>
      %65 = arith.addf %64, %54 : vector<8x128xf32>
      %c0_26 = arith.constant 0 : index
      %c0_27 = arith.constant 0 : index
      %c0_28 = arith.constant 0 : index
      %66 = vector.load %arg9[%c0_26, %c0_27, %c0_28] : memref<4x8x128xf32, #tpu.memory_space<vmem>>, vector<1x8x128xf32>
      %67 = vector.shape_cast %66 : vector<1x8x128xf32> to vector<8x128xf32>
      %68 = vector.shape_cast %65 : vector<8x128xf32> to vector<1x8x128xf32>
      tpu.vector_store %arg9[%c0_26, %c0_27, %c0_28], %68 {strides = array<i32>} : memref<4x8x128xf32, #tpu.memory_space<vmem>>, vector<1x8x128xf32>,
      %c0_29 = arith.constant 0 : index
      %c0_30 = arith.constant 0 : index
      %c0_31 = arith.constant 0 : index
      %69 = vector.load %arg10[%c0_29, %c0_30, %c0_31] : memref<4x8x128xf32, #tpu.memory_space<vmem>>, vector<1x8x128xf32>
      %70 = vector.shape_cast %69 : vector<1x8x128xf32> to vector<8x128xf32>
      %71 = arith.addf %70, %55 : vector<8x128xf32>
      %c0_32 = arith.constant 0 : index
      %c0_33 = arith.constant 0 : index
      %c0_34 = arith.constant 0 : index
      %72 = vector.load %arg10[%c0_32, %c0_33, %c0_34] : memref<4x8x128xf32, #tpu.memory_space<vmem>>, vector<1x8x128xf32>
      %73 = vector.shape_cast %72 : vector<1x8x128xf32> to vector<8x128xf32>
      %74 = vector.shape_cast %71 : vector<8x128xf32> to vector<1x8x128xf32>
      tpu.vector_store %arg10[%c0_32, %c0_33, %c0_34], %74 {strides = array<i32>} : memref<4x8x128xf32, #tpu.memory_space<vmem>>, vector<1x8x128xf32>,
      %75 = vector.extract_strided_slice %47 {offsets = [1, 0, 0], sizes = [1, 8, 128], strides = [1, 1, 1]} : vector<4x8x128xf32> to vector<1x8x128xf32>
      %76 = vector.shape_cast %75 : vector<1x8x128xf32> to vector<8x128xf32>
      %c1_i32_35 = arith.constant 1 : i32
      %77 = vector.broadcast %c1_i32_35 : i32 to vector<8x128xi32>
      %78 = arith.cmpi eq, %10, %77 : vector<8x128xi32>
      %79 = arith.extui %78 : vector<8x128xi1> to vector<8x128xi32>
      %80 = arith.sitofp %79 : vector<8x128xi32> to vector<8x128xf32>
      %81 = arith.mulf %76, %32 : vector<8x128xf32>
      %82 = arith.mulf %80, %32 : vector<8x128xf32>
      %c1 = arith.constant 1 : index
      %c0_36 = arith.constant 0 : index
      %c0_37 = arith.constant 0 : index
      %83 = vector.load %arg8[%c1, %c0_36, %c0_37] : memref<4x8x128xf32, #tpu.memory_space<vmem>>, vector<1x8x128xf32>
      %84 = vector.shape_cast %83 : vector<1x8x128xf32> to vector<8x128xf32>
      %85 = arith.mulf %81, %82 : vector<8x128xf32>
      %86 = arith.addf %84, %85 : vector<8x128xf32>
      %c1_38 = arith.constant 1 : index
      %c0_39 = arith.constant 0 : index
      %c0_40 = arith.constant 0 : index
      %87 = vector.load %arg8[%c1_38, %c0_39, %c0_40] : memref<4x8x128xf32, #tpu.memory_space<vmem>>, vector<1x8x128xf32>
      %88 = vector.shape_cast %87 : vector<1x8x128xf32> to vector<8x128xf32>
      %89 = vector.shape_cast %86 : vector<8x128xf32> to vector<1x8x128xf32>
      tpu.vector_store %arg8[%c1_38, %c0_39, %c0_40], %89 {strides = array<i32>} : memref<4x8x128xf32, #tpu.memory_space<vmem>>, vector<1x8x128xf32>,
      %c1_41 = arith.constant 1 : index
      %c0_42 = arith.constant 0 : index
      %c0_43 = arith.constant 0 : index
      %90 = vector.load %arg9[%c1_41, %c0_42, %c0_43] : memref<4x8x128xf32, #tpu.memory_space<vmem>>, vector<1x8x128xf32>
      %91 = vector.shape_cast %90 : vector<1x8x128xf32> to vector<8x128xf32>
      %92 = arith.addf %91, %81 : vector<8x128xf32>
      %c1_44 = arith.constant 1 : index
      %c0_45 = arith.constant 0 : index
      %c0_46 = arith.constant 0 : index
      %93 = vector.load %arg9[%c1_44, %c0_45, %c0_46] : memref<4x8x128xf32, #tpu.memory_space<vmem>>, vector<1x8x128xf32>
      %94 = vector.shape_cast %93 : vector<1x8x128xf32> to vector<8x128xf32>
      %95 = vector.shape_cast %92 : vector<8x128xf32> to vector<1x8x128xf32>
      tpu.vector_store %arg9[%c1_44, %c0_45, %c0_46], %95 {strides = array<i32>} : memref<4x8x128xf32, #tpu.memory_space<vmem>>, vector<1x8x128xf32>,
      %c1_47 = arith.constant 1 : index
      %c0_48 = arith.constant 0 : index
      %c0_49 = arith.constant 0 : index
      %96 = vector.load %arg10[%c1_47, %c0_48, %c0_49] : memref<4x8x128xf32, #tpu.memory_space<vmem>>, vector<1x8x128xf32>
      %97 = vector.shape_cast %96 : vector<1x8x128xf32> to vector<8x128xf32>
      %98 = arith.addf %97, %82 : vector<8x128xf32>
      %c1_50 = arith.constant 1 : index
      %c0_51 = arith.constant 0 : index
      %c0_52 = arith.constant 0 : index
      %99 = vector.load %arg10[%c1_50, %c0_51, %c0_52] : memref<4x8x128xf32, #tpu.memory_space<vmem>>, vector<1x8x128xf32>
      %100 = vector.shape_cast %99 : vector<1x8x128xf32> to vector<8x128xf32>
      %101 = vector.shape_cast %98 : vector<8x128xf32> to vector<1x8x128xf32>
      tpu.vector_store %arg10[%c1_50, %c0_51, %c0_52], %101 {strides = array<i32>} : memref<4x8x128xf32, #tpu.memory_space<vmem>>, vector<1x8x128xf32>,
      %102 = vector.extract_strided_slice %47 {offsets = [2, 0, 0], sizes = [1, 8, 128], strides = [1, 1, 1]} : vector<4x8x128xf32> to vector<1x8x128xf32>
      %103 = vector.shape_cast %102 : vector<1x8x128xf32> to vector<8x128xf32>
      %c2_i32 = arith.constant 2 : i32
      %104 = vector.broadcast %c2_i32 : i32 to vector<8x128xi32>
      %105 = arith.cmpi eq, %10, %104 : vector<8x128xi32>
      %106 = arith.extui %105 : vector<8x128xi1> to vector<8x128xi32>
      %107 = arith.sitofp %106 : vector<8x128xi32> to vector<8x128xf32>
      %108 = arith.mulf %103, %32 : vector<8x128xf32>
      %109 = arith.mulf %107, %32 : vector<8x128xf32>
      %c2 = arith.constant 2 : index
      %c0_53 = arith.constant 0 : index
      %c0_54 = arith.constant 0 : index
      %110 = vector.load %arg8[%c2, %c0_53, %c0_54] : memref<4x8x128xf32, #tpu.memory_space<vmem>>, vector<1x8x128xf32>
      %111 = vector.shape_cast %110 : vector<1x8x128xf32> to vector<8x128xf32>
      %112 = arith.mulf %108, %109 : vector<8x128xf32>
      %113 = arith.addf %111, %112 : vector<8x128xf32>
      %c2_55 = arith.constant 2 : index
      %c0_56 = arith.constant 0 : index
      %c0_57 = arith.constant 0 : index
      %114 = vector.load %arg8[%c2_55, %c0_56, %c0_57] : memref<4x8x128xf32, #tpu.memory_space<vmem>>, vector<1x8x128xf32>
      %115 = vector.shape_cast %114 : vector<1x8x128xf32> to vector<8x128xf32>
      %116 = vector.shape_cast %113 : vector<8x128xf32> to vector<1x8x128xf32>
      tpu.vector_store %arg8[%c2_55, %c0_56, %c0_57], %116 {strides = array<i32>} : memref<4x8x128xf32, #tpu.memory_space<vmem>>, vector<1x8x128xf32>,
      %c2_58 = arith.constant 2 : index
      %c0_59 = arith.constant 0 : index
      %c0_60 = arith.constant 0 : index
      %117 = vector.load %arg9[%c2_58, %c0_59, %c0_60] : memref<4x8x128xf32, #tpu.memory_space<vmem>>, vector<1x8x128xf32>
      %118 = vector.shape_cast %117 : vector<1x8x128xf32> to vector<8x128xf32>
      %119 = arith.addf %118, %108 : vector<8x128xf32>
      %c2_61 = arith.constant 2 : index
      %c0_62 = arith.constant 0 : index
      %c0_63 = arith.constant 0 : index
      %120 = vector.load %arg9[%c2_61, %c0_62, %c0_63] : memref<4x8x128xf32, #tpu.memory_space<vmem>>, vector<1x8x128xf32>
      %121 = vector.shape_cast %120 : vector<1x8x128xf32> to vector<8x128xf32>
      %122 = vector.shape_cast %119 : vector<8x128xf32> to vector<1x8x128xf32>
      tpu.vector_store %arg9[%c2_61, %c0_62, %c0_63], %122 {strides = array<i32>} : memref<4x8x128xf32, #tpu.memory_space<vmem>>, vector<1x8x128xf32>,
      %c2_64 = arith.constant 2 : index
      %c0_65 = arith.constant 0 : index
      %c0_66 = arith.constant 0 : index
      %123 = vector.load %arg10[%c2_64, %c0_65, %c0_66] : memref<4x8x128xf32, #tpu.memory_space<vmem>>, vector<1x8x128xf32>
      %124 = vector.shape_cast %123 : vector<1x8x128xf32> to vector<8x128xf32>
      %125 = arith.addf %124, %109 : vector<8x128xf32>
      %c2_67 = arith.constant 2 : index
      %c0_68 = arith.constant 0 : index
      %c0_69 = arith.constant 0 : index
      %126 = vector.load %arg10[%c2_67, %c0_68, %c0_69] : memref<4x8x128xf32, #tpu.memory_space<vmem>>, vector<1x8x128xf32>
      %127 = vector.shape_cast %126 : vector<1x8x128xf32> to vector<8x128xf32>
      %128 = vector.shape_cast %125 : vector<8x128xf32> to vector<1x8x128xf32>
      tpu.vector_store %arg10[%c2_67, %c0_68, %c0_69], %128 {strides = array<i32>} : memref<4x8x128xf32, #tpu.memory_space<vmem>>, vector<1x8x128xf32>,
      %129 = vector.extract_strided_slice %47 {offsets = [3, 0, 0], sizes = [1, 8, 128], strides = [1, 1, 1]} : vector<4x8x128xf32> to vector<1x8x128xf32>
      %130 = vector.shape_cast %129 : vector<1x8x128xf32> to vector<8x128xf32>
      %c3_i32 = arith.constant 3 : i32
      %131 = vector.broadcast %c3_i32 : i32 to vector<8x128xi32>
      %132 = arith.cmpi eq, %10, %131 : vector<8x128xi32>
      %133 = arith.extui %132 : vector<8x128xi1> to vector<8x128xi32>
      %134 = arith.sitofp %133 : vector<8x128xi32> to vector<8x128xf32>
      %135 = arith.mulf %130, %32 : vector<8x128xf32>
      %136 = arith.mulf %134, %32 : vector<8x128xf32>
      %c3 = arith.constant 3 : index
      %c0_70 = arith.constant 0 : index
      %c0_71 = arith.constant 0 : index
      %137 = vector.load %arg8[%c3, %c0_70, %c0_71] : memref<4x8x128xf32, #tpu.memory_space<vmem>>, vector<1x8x128xf32>
      %138 = vector.shape_cast %137 : vector<1x8x128xf32> to vector<8x128xf32>
      %139 = arith.mulf %135, %136 : vector<8x128xf32>
      %140 = arith.addf %138, %139 : vector<8x128xf32>
      %c3_72 = arith.constant 3 : index
      %c0_73 = arith.constant 0 : index
      %c0_74 = arith.constant 0 : index
      %141 = vector.load %arg8[%c3_72, %c0_73, %c0_74] : memref<4x8x128xf32, #tpu.memory_space<vmem>>, vector<1x8x128xf32>
      %142 = vector.shape_cast %141 : vector<1x8x128xf32> to vector<8x128xf32>
      %143 = vector.shape_cast %140 : vector<8x128xf32> to vector<1x8x128xf32>
      tpu.vector_store %arg8[%c3_72, %c0_73, %c0_74], %143 {strides = array<i32>} : memref<4x8x128xf32, #tpu.memory_space<vmem>>, vector<1x8x128xf32>,
      %c3_75 = arith.constant 3 : index
      %c0_76 = arith.constant 0 : index
      %c0_77 = arith.constant 0 : index
      %144 = vector.load %arg9[%c3_75, %c0_76, %c0_77] : memref<4x8x128xf32, #tpu.memory_space<vmem>>, vector<1x8x128xf32>
      %145 = vector.shape_cast %144 : vector<1x8x128xf32> to vector<8x128xf32>
      %146 = arith.addf %145, %135 : vector<8x128xf32>
      %c3_78 = arith.constant 3 : index
      %c0_79 = arith.constant 0 : index
      %c0_80 = arith.constant 0 : index
      %147 = vector.load %arg9[%c3_78, %c0_79, %c0_80] : memref<4x8x128xf32, #tpu.memory_space<vmem>>, vector<1x8x128xf32>
      %148 = vector.shape_cast %147 : vector<1x8x128xf32> to vector<8x128xf32>
      %149 = vector.shape_cast %146 : vector<8x128xf32> to vector<1x8x128xf32>
      tpu.vector_store %arg9[%c3_78, %c0_79, %c0_80], %149 {strides = array<i32>} : memref<4x8x128xf32, #tpu.memory_space<vmem>>, vector<1x8x128xf32>,
      %c3_81 = arith.constant 3 : index
      %c0_82 = arith.constant 0 : index
      %c0_83 = arith.constant 0 : index
      %150 = vector.load %arg10[%c3_81, %c0_82, %c0_83] : memref<4x8x128xf32, #tpu.memory_space<vmem>>, vector<1x8x128xf32>
      %151 = vector.shape_cast %150 : vector<1x8x128xf32> to vector<8x128xf32>
      %152 = arith.addf %151, %136 : vector<8x128xf32>
      %c3_84 = arith.constant 3 : index
      %c0_85 = arith.constant 0 : index
      %c0_86 = arith.constant 0 : index
      %153 = vector.load %arg10[%c3_84, %c0_85, %c0_86] : memref<4x8x128xf32, #tpu.memory_space<vmem>>, vector<1x8x128xf32>
      %154 = vector.shape_cast %153 : vector<1x8x128xf32> to vector<8x128xf32>
      %155 = vector.shape_cast %152 : vector<8x128xf32> to vector<1x8x128xf32>
      tpu.vector_store %arg10[%c3_84, %c0_85, %c0_86], %155 {strides = array<i32>} : memref<4x8x128xf32, #tpu.memory_space<vmem>>, vector<1x8x128xf32>,
    } else {
    }
    %c0_i32_7 = arith.constant 0 : i32
    %16 = arith.cmpi eq, %arg2, %c0_i32_7 : i32
    %17 = arith.extui %16 : i1 to i32
    %c0_i32_8 = arith.constant 0 : i32
    %18 = arith.cmpi ne, %17, %c0_i32_8 : i32
    scf.if %18 {
      %c0_9 = arith.constant 0 : index
      %c0_10 = arith.constant 0 : index
      %c0_11 = arith.constant 0 : index
      %19 = vector.load %arg8[%c0_9, %c0_10, %c0_11] : memref<4x8x128xf32, #tpu.memory_space<vmem>>, vector<4x8x128xf32>
      %cst = arith.constant dense<0.000000e+00> : vector<4x128xf32>
      %20 = vector.multi_reduction <add>, %19, %cst [1] : vector<4x8x128xf32> to vector<4x128xf32>
      %c0_12 = arith.constant 0 : index
      %c0_13 = arith.constant 0 : index
      %c0_14 = arith.constant 0 : index
      %c0_15 = arith.constant 0 : index
      %21 = vector.load %arg5[%c0_12, %c0_13, %c0_14, %c0_15] : memref<1x1x4x128xf32, #tpu.memory_space<vmem>>, vector<1x1x4x128xf32>
      %22 = vector.shape_cast %21 : vector<1x1x4x128xf32> to vector<4x128xf32>
      %23 = vector.shape_cast %20 : vector<4x128xf32> to vector<1x1x4x128xf32>
      tpu.vector_store %arg5[%c0_12, %c0_13, %c0_14, %c0_15], %23 {strides = array<i32>} : memref<1x1x4x128xf32, #tpu.memory_space<vmem>>, vector<1x1x4x128xf32>,
      %c0_16 = arith.constant 0 : index
      %c0_17 = arith.constant 0 : index
      %c0_18 = arith.constant 0 : index
      %24 = vector.load %arg9[%c0_16, %c0_17, %c0_18] : memref<4x8x128xf32, #tpu.memory_space<vmem>>, vector<4x8x128xf32>
      %cst_19 = arith.constant dense<0.000000e+00> : vector<4x128xf32>
      %25 = vector.multi_reduction <add>, %24, %cst_19 [1] : vector<4x8x128xf32> to vector<4x128xf32>
      %c0_20 = arith.constant 0 : index
      %c0_21 = arith.constant 0 : index
      %c0_22 = arith.constant 0 : index
      %c0_23 = arith.constant 0 : index
      %26 = vector.load %arg6[%c0_20, %c0_21, %c0_22, %c0_23] : memref<1x1x4x128xf32, #tpu.memory_space<vmem>>, vector<1x1x4x128xf32>
      %27 = vector.shape_cast %26 : vector<1x1x4x128xf32> to vector<4x128xf32>
      %28 = vector.shape_cast %25 : vector<4x128xf32> to vector<1x1x4x128xf32>
      tpu.vector_store %arg6[%c0_20, %c0_21, %c0_22, %c0_23], %28 {strides = array<i32>} : memref<1x1x4x128xf32, #tpu.memory_space<vmem>>, vector<1x1x4x128xf32>,
      %c0_24 = arith.constant 0 : index
      %c0_25 = arith.constant 0 : index
      %c0_26 = arith.constant 0 : index
      %29 = vector.load %arg10[%c0_24, %c0_25, %c0_26] : memref<4x8x128xf32, #tpu.memory_space<vmem>>, vector<4x8x128xf32>
      %cst_27 = arith.constant dense<0.000000e+00> : vector<4x128xf32>
      %30 = vector.multi_reduction <add>, %29, %cst_27 [1] : vector<4x8x128xf32> to vector<4x128xf32>
      %c0_28 = arith.constant 0 : index
      %c0_29 = arith.constant 0 : index
      %c0_30 = arith.constant 0 : index
      %c0_31 = arith.constant 0 : index
      %31 = vector.load %arg7[%c0_28, %c0_29, %c0_30, %c0_31] : memref<1x1x4x128xf32, #tpu.memory_space<vmem>>, vector<1x1x4x128xf32>
      %32 = vector.shape_cast %31 : vector<1x1x4x128xf32> to vector<4x128xf32>
      %33 = vector.shape_cast %30 : vector<4x128xf32> to vector<1x1x4x128xf32>
      tpu.vector_store %arg7[%c0_28, %c0_29, %c0_30, %c0_31], %33 {strides = array<i32>} : memref<1x1x4x128xf32, #tpu.memory_space<vmem>>, vector<1x1x4x128xf32>,
    } else {
    }
    return
  }
  func.func @transform_0(%arg0: i32, %arg1: i32, %arg2: i32) -> (i32, i32, i32, i32) {
    %c1_i32 = arith.constant 1 : i32
    %0 = arith.muli %arg1, %c1_i32 : i32
    %1 = arith.addi %0, %arg2 : i32
    %c0_i32 = arith.constant 0 : i32
    %2 = arith.minsi %1, %c0_i32 : i32
    %c0_i32_0 = arith.constant 0 : i32
    %c0_i32_1 = arith.constant 0 : i32
    %c0_i32_2 = arith.constant 0 : i32
    return %arg0, %c0_i32_0, %2, %c0_i32_1 : i32, i32, i32, i32
  }
  func.func @transform_1(%arg0: i32, %arg1: i32, %arg2: i32) -> (i32, i32, i32, i32) {
    %c1_i32 = arith.constant 1 : i32
    %0 = arith.muli %arg1, %c1_i32 : i32
    %1 = arith.addi %0, %arg2 : i32
    %c0_i32 = arith.constant 0 : i32
    %2 = arith.minsi %1, %c0_i32 : i32
    %c0_i32_0 = arith.constant 0 : i32
    %c0_i32_1 = arith.constant 0 : i32
    %c0_i32_2 = arith.constant 0 : i32
    return %arg0, %c0_i32_0, %2, %c0_i32_1 : i32, i32, i32, i32
  }
  func.func @transform_2(%arg0: i32, %arg1: i32, %arg2: i32) -> (i32, i32, i32, i32) {
    %c0_i32 = arith.constant 0 : i32
    %c0_i32_0 = arith.constant 0 : i32
    %c0_i32_1 = arith.constant 0 : i32
    return %arg0, %arg1, %c0_i32, %c0_i32_0 : i32, i32, i32, i32
  }
  func.func @transform_3(%arg0: i32, %arg1: i32, %arg2: i32) -> (i32, i32, i32, i32) {
    %c0_i32 = arith.constant 0 : i32
    %c0_i32_0 = arith.constant 0 : i32
    %c0_i32_1 = arith.constant 0 : i32
    return %arg0, %arg1, %c0_i32, %c0_i32_0 : i32, i32, i32, i32
  }
  func.func @transform_4(%arg0: i32, %arg1: i32, %arg2: i32) -> (i32, i32, i32, i32) {
    %c0_i32 = arith.constant 0 : i32
    %c0_i32_0 = arith.constant 0 : i32
    %c0_i32_1 = arith.constant 0 : i32
    return %arg0, %arg1, %c0_i32, %c0_i32_0 : i32, i32, i32, i32
  }
}

</mosaic_0001>

<bundles_post_ra>
// kernel: tpu_custom_call.1
= control target key start
LH: loop header
LB: loop body
LE: loop exit
PB: predicated region body
PF: predicated region fallthrough
CT: control target
= control target key end

     0   :  { %s1597_s0 = inlined_call_operand.hbm [shape: f32[2,4,8,128], index: 0, kind: input, shape index: {}]   ;;  %s1598_s1 = inlined_call_operand.hbm [shape: s8[2,1,8,128], index: 1, kind: input, shape index: {}]   ;;  %s1599_s2 = inlined_call_operand.hbm [shape: f32[2,1,4,128], index: 2, kind: output, shape index: {0}]   ;;  %s1600_s3 = inlined_call_operand.hbm [shape: f32[2,1,4,128], index: 3, kind: output, shape index: {1}]   ;;  %s1601_s4 = inlined_call_operand.hbm [shape: f32[2,1,4,128], index: 4, kind: output, shape index: {2}]  }
   0x1   :  { %1605 = sst [smem:[#allocation18_spill]] %s1597_s0 }
   0x2   :  { %10 = vsyncpa [#allocation6], 0 }
   0x3   :  { %12 = vsyncpa [#allocation6 + $0x1], 0 }
   0x4   :  { %13 = vsyncpa [#allocation9], 0 }
   0x5   :  { %15 = vsyncpa [#allocation9 + $0x1], 0 }
   0x6   :  { %16 = vsyncpa [#allocation7], 0 }
   0x7   :  { %18 = vsyncpa [#allocation7 + $0x1], 0 }
   0x8   :  { %19 = vsyncpa [#allocation12], 0 }
   0x9   :  { %21 = vsyncpa [#allocation12 + $0x1], 0  ;;  %s1261_s15 = smov 0   ;;  %s1263_s16 = smov 0  }
   0xa   :  { %s1265_s17 = smov 0   ;;  %s1267_s18 = smov 0  }
   0xb   :  { %s1269_s19 = smov 0   ;;  %s1271_s20 = smov 0  }
   0xc LB: > { %s1292_s21 = sadd.s32 4294967295, %s1226_s20   ;;  %s1603_s22 = sadd.s32 4294967294, %s1226_s20   ;;  %s1226_s20 = sphi %s1271_s20, %s27_s20   ;;  %s1222_s19 = sphi %s1269_s19, %s1624_s19   ;;  %s1218_s18 = sphi %s1267_s18, %s1623_s18   ;;  %s1214_s17 = sphi %s1265_s17, %s1622_s17   ;;  %s1210_s16 = sphi %s1263_s16, %s1621_s16   ;;  %s1206_s15 = sphi %s1261_s15, %s1620_s15  }
   0xd   : > { %s46_s23 = sadd.s32 1, %s1222_s19  ;;  %s61_s24 = sadd.s32 1, %s1214_s17 }
   0xe   : > { %p48_p0 = scmp.ge.s32.totalorder %s46_s23, 2  ;;  %p68_p1 = scmp.ne.s32.totalorder %s1214_s17, %s1210_s16 }
   0xf   : > { %p69_p2 = scmp.eq.s32.totalorder %s1226_s20, 0  ;;  %p74_p3 = scmp.ne.s32.totalorder %s1210_s16, %s1206_s15 }
  0x10   : > { %s1626_s23 = smov (%p48_p0, %s46_s23), 0  ;;  %p75_p5 = scmp.eq.s32.totalorder %s1292_s21, 0 }
  0x11   : > { %p1304_p4 = por %p69_p2, %p68_p1  ;;  %s56_s26 = ssub.s32 %s1222_s19, %s1626_s23 }
  0x12   : > { %p134_p6 = scmp.eq.s32.totalorder %s1292_s21, 1  ;;  %p59_p7 = scmp.eq.s32.totalorder %s56_s26, 0 }
  0x13   : > { %p1312_p8 = por %p75_p5, %p74_p3  ;;  %p140_p10 = scmp.eq.s32.totalorder %s1603_s22, 1 }
  0x14   : > { %p1316_p9 = por %p134_p6, %p68_p1  ;;  %p957_p13 = scmp.lt.s32.totalorder %s1226_s20, 2 }
  0x15   : > { %s1607_s27 = scalar_select %p1312_p8, 1, 0 }
  0x16   : > { %s1608_s28 = scalar_select %p1316_p9, 1, 0 }
  0x17   : > { %s1323_s29 = scalar_select %p59_p7, %s1214_s17, %s61_s24  }
  0x18   : > { %p1325_p11 = por %p140_p10, %p74_p3  ;;  %s1332_s5 = sand.u32 1, %s1214_s17  }
  0x19   : > { %s901_s6 = sshll.u32 %s1332_s5, 5  ;;  %s929_s7 = sshll.u32 %s1222_s19, 9 }
  0x1a   : > { %s1609_s30 = scalar_select %p1325_p11, 1, 0 }
  0x1b   : > { %s1610_s0 = sld [smem:[#allocation18_spill]]  ;;  %s220_s11 = scalar_lea.vmem [#allocation5], %s901_s6 }
  0x1c   : > { %s231_s12 = sshll.u32 %s220_s11, 4  ;;  %p1345_p0 = pnand %p957_p13, %p1304_p4  ;;  %s1341_s12 = int_to_ptr.vmem [resolvable:$true] %s231_s12 }
  0x1d   : > { %s217_s14 = scalar_lea.sflag [#allocation6], %s1332_s5 }
  0x1e   : > { %p1022_p3 = pneg %p1345_p0 }
  0x21   : > { %s1339_s10 = scalar_lea.hbm %s1610_s0, %s929_s7  ;;  %s1025_s25 = scalar_lea.hbm %s1610_s0, 1024 }
  0x22   : > { %s1020_s24 = scalar_lea.hbm %s1339_s10, 512  ;;  %p1026_p4 = scmp.lt.u32.totalorder %s1339_s10, %s1610_s0 }
  0x23   : > { %p1021_p2 = scmp.ne.s32.totalorder %s1339_s10, %s1020_s24  ;;  %p1027_p7 = scmp.lt.u32.totalorder %s1025_s25, %s1020_s24 }
  0x24   : > { %p1029_p13 = scmp.lt.u32.totalorder %s1020_s24, %s1339_s10 }
  0x25   : > { %p1023_p5 = pnand %p1022_p3, %p1021_p2  ;;  %p1028_p10 = por %p1027_p7, %p1026_p4 }
  0x27   : > { %p1024_p6 = pneg %p1023_p5  ;;  %p1030_p12 = por %p1029_p13, %p1028_p10 }
  0x29   : > { %p1031_p1 = pnand %p1030_p12, %p1024_p6 }
  0x2b   : > { %1034 = shalt.err (!%p1031_p1)
}
  0x2c   : > { %s1035_s9 = scalar_lea.vmem %s1341_s12, 512  ;;  %s1228_s11 = smov [#allocation5]  }
  0x2d   : > { %p1036_p2 = scmp.ne.s32.totalorder %s1341_s12, %s1035_s9  ;;  %s1040_s26 = sshll.u32 %s1228_s11, 4  ;;  %s1041_s26 = int_to_ptr.vmem [resolvable:$false] %s1040_s26 }
  0x2e   : > { %s1042_s6 = scalar_lea.vmem %s1041_s26, 1024  ;;  %p1043_p9 = scmp.lt.s32.totalorder %s1341_s12, %s1041_s26 }
  0x2f   : > { %p1038_p5 = pnand %p1036_p2, %p1022_p3  ;;  %p1044_p4 = scmp.lt.s32.totalorder %s1042_s6, %s1035_s9 }
  0x31   : > { %p1039_p11 = pneg %p1038_p5  ;;  %p1045_p7 = por %p1044_p4, %p1043_p9 }
  0x33   : > { %p1046_p10 = pnand %p1045_p7, %p1039_p11 }
  0x35   : > { %1049 = shalt.err (!%p1046_p10)
}
  0x36   : > { %s1229_s24 = smov 128   ;;  %s1230_s25 = smov 8  }
  0x37   : > { %943 = dma.hbm_to_vmem [thread:$0]  (!%p1345_p0), %s1339_s10, 512, %s1341_s12, %s217_s14, %s1229_s24, %s1229_s24, %s1230_s25  }
  0x38   : > { %p261_p12 = scmp.lt.s32.totalorder %s1226_s20, 3  ;;  %s904_s7 = sshll.u32 %s1332_s5, 1 }
  0x39   : > { %s905_s8 = sshll.u32 %s1222_s19, 5  ;;  %p1612_p9 = scmp.ge.s32.totalorder %s1226_s20, 1 }
  0x3a   : > { %s1390_s6 = scalar_lea.hbm %s1598_s1, %s905_s8  ;;  %s245_s22 = scalar_lea.vmem [#allocation8], %s904_s7 }
  0x3b   : > { %p1383_p11 = pnand %p1612_p9, %p261_p12  ;;  %s256_s0 = sshll.u32 %s245_s22, 4  ;;  %s257_s0 = int_to_ptr.vmem [resolvable:$true] %s256_s0 }
  0x3c   : > { %s242_s10 = scalar_lea.sflag [#allocation9], %s1332_s5  ;;  %s1050_s12 = scalar_lea.hbm %s1390_s6, 32 }
  0x3d   : > { %s1613_s9 = scalar_select %p1383_p11, 1, 0 }
  0x3e   : > { %p1051_p1 = scmp.ne.s32.totalorder %s1390_s6, %s1050_s12  ;;  %s1055_s25 = scalar_lea.hbm %s1598_s1, 64 }
  0x3f   : > { %p1056_p2 = scmp.lt.u32.totalorder %s1390_s6, %s1598_s1  ;;  %p1057_p5 = scmp.lt.u32.totalorder %s1055_s25, %s1050_s12 }
  0x40   : > { %p1053_p6 = pnand %p1051_p1, %p1022_p3  ;;  %p1059_p7 = scmp.lt.u32.totalorder %s1050_s12, %s1390_s6 }
  0x41   : > { %p1058_p4 = por %p1057_p5, %p1056_p2 }
  0x42   : > { %p1054_p13 = pneg %p1053_p6 }
  0x43   : > { %p1060_p10 = por %p1059_p7, %p1058_p4 }
  0x45   : > { %p1061_p12 = pnand %p1060_p10, %p1054_p13 }
  0x47   : > { %1064 = shalt.err (!%p1061_p12)
}
  0x48   : > { %s1065_s22 = scalar_lea.vmem %s257_s0, 32  ;;  %s1231_s5 = smov [#allocation8]  }
  0x49   : > { %p1066_p9 = scmp.ne.s32.totalorder %s257_s0, %s1065_s22  ;;  %s1070_s7 = sshll.u32 %s1231_s5, 4  ;;  %s1071_s7 = int_to_ptr.vmem [resolvable:$false] %s1070_s7 }
  0x4a   : > { %s1072_s26 = scalar_lea.vmem %s1071_s7, 64  ;;  %p1073_p8 = scmp.lt.s32.totalorder %s257_s0, %s1071_s7 }
  0x4b   : > { %p1068_p1 = pnand %p1066_p9, %p1022_p3  ;;  %p1074_p11 = scmp.lt.s32.totalorder %s1072_s26, %s1065_s22 }
  0x4d   : > { %p1069_p6 = pneg %p1068_p1  ;;  %p1075_p2 = por %p1074_p11, %p1073_p8 }
  0x4f   : > { %p1076_p5 = pnand %p1075_p2, %p1069_p6 }
  0x51   : > { %1079 = shalt.err (!%p1076_p5)
}
  0x52   : > { %946 = dma.hbm_to_vmem [thread:$0]  (!%p1345_p0), %s1390_s6, 32, %s257_s0, %s242_s10  }
  0x53   : > { %p1614_p13 = scmp.ne.s32.totalorder %s1613_s9, 0 }
  0x54   : > { %s1415_s12 = sand.u32 (!%p1614_p13), 1, %s1210_s16   ;;  %p1615_p3 = scmp.ne.s32.totalorder (!%p1614_p13), %s1607_s27, 0 }
  0x55   : > { %265 = sbr.rel (%p1614_p13) target bundleno = 227 (0xe3), region = 28  ;;  %s907_s14 = sshll.u32 (!%p1614_p13), %s1415_s12, 5 }
  0x56   : > { %s268_s24 = scalar_lea.sflag (!%p1614_p13), [#allocation6], %s1415_s12  ;;  %s271_s25 = scalar_lea.vmem (!%p1614_p13), [#allocation5], %s907_s14 }
  0x5c   : > { %1189 = dma.done.wait (%p1615_p3), %s268_s24, 512  }
  0x5d   : > { %1191 = vsyncadd (%p1615_p3), %s268_s24, 4294966784  ;;  %s908_s0 = sshll.u32 %s1415_s12, 1  ;;  %s277_s13 = scalar_lea.sflag [#allocation9], %s1415_s12 }
  0x5e   : > { %s280_s9 = scalar_lea.vmem [#allocation8], %s908_s0 }
  0x5f   : > { %1193 = dma.done.wait (%p1615_p3), %s277_s13, 32  }
  0x60   : > { %1195 = vsyncadd (%p1615_p3), %s277_s13, 4294967264  ;;  %v447_v0 = vlaneseq  ;;  %v443_v5 = vld [vmem:[%s271_s25] sm:$0xff]  ;;  %v444_v6 = vld [vmem:[%s271_s25 + $0x8] sm:$0xff]  ;;  %v1232_v16 = vmov 0.0   ;;  %vm591_vm5 = vcmask 1041409   ;;  %s1448_s27 = sshll.u32 %s1415_s12, 2 }
  0x61   : > { %v445_v7 = vld [vmem:[%s271_s25 + $0x10] sm:$0xff]  ;;  %v446_v8 = vld [vmem:[%s271_s25 + $0x18] sm:$0xff]  ;;  %v346_v9 = vld [vmem:[%s280_s9] sm:$0x3]  ;;  %vm593_vm6 = vcmask 1042434   ;;  %vm595_vm7 = vcmask 1043459  }
  0x62   : > { %v448_v1 = vshrl.u32 %v447_v0, 7  ;;  %v450_v2 = vand.u32 127, %v447_v0  ;;  %v347_v15 = vunpack.c.0.s8 %v346_v9  ;;  %s319_s6 = scalar_lea.vmem [#allocation13], %s1448_s27  ;;  %s312_s10 = scalar_lea.vmem [#allocation11], %s1448_s27 }
  0x63   : > { %s712_s8 = sshll.u32 %s312_s10, 4  ;;  %s305_s11 = scalar_lea.vmem [#allocation10], %s1448_s27  ;;  %s1474_s8 = int_to_ptr.vmem [resolvable:$true] %s712_s8 }
  0x64   : > { %v454_v3 = vmul.u32 128, %v448_v1  ;;  %vm487_vm1 = vcmp.eq.s32.totalorder %v347_v15, 0  ;;  %vm502_vm2 = vcmp.eq.s32.totalorder %v347_v15, 1  ;;  %vm520_vm3 = vcmp.eq.s32.totalorder %v347_v15, 2  ;;  %s698_s22 = sshll.u32 %s305_s11, 4  ;;  %s678_s5 = sand.u32 1, %s1292_s21   ;;  %s1476_s22 = int_to_ptr.vmem [resolvable:$true] %s698_s22 }
  0x65   : > { %vm538_vm4 = vcmp.eq.s32.totalorder %v347_v15, 3  ;;  %v917_v20 = vsel %vm487_vm1, 1.0, %v1232_v16  ;;  %v918_v21 = vsel %vm502_vm2, 1.0, %v1232_v16  ;;  %v919_v22 = vsel %vm520_vm3, 1.0, %v1232_v16  ;;  %s924_s7 = sshll.u32 %s1218_s18, 6  ;;  %s726_s26 = sshll.u32 %s319_s6, 4  ;;  %s1485_s26 = int_to_ptr.vmem [resolvable:$true] %s726_s26 }
  0x66   : > { %v455_v4 = vadd.s32 %v454_v3, %v450_v2  ;;  %v920_v26 = vsel %vm538_vm4, 1.0, %v1232_v16  ;;  %s1482_s14 = scalar_lea.hbm %s1600_s3, %s924_s7  ;;  %s1490_s0 = scalar_lea.hbm %s1601_s4, %s924_s7 }
  0x67   : > { %s1501_s18 = scalar_lea.sflag [#allocation12], %s678_s5  ;;  %s1080_s21 = scalar_lea.vmem %s1474_s8, 64 }
  0x68   : > { %vm456_vm0 = vcmp.lt.s32.totalorder %v455_v4, 256  ;;  %p1081_p8 = scmp.ne.s32.totalorder %s1474_s8, %s1080_s21  ;;  %p1616_p0 = scmp.ne.s32.totalorder %s1608_s28, 0 }
  0x69   : > { %v460_v10 = vsel %vm456_vm0, %v443_v5, 0.0  ;;  %v461_v11 = vsel %vm456_vm0, %v444_v6, 0.0  ;;  %v462_v12 = vsel %vm456_vm0, %v445_v7, 0.0  ;;  %v463_v13 = vsel %vm456_vm0, %v446_v8, 0.0  ;;  %s1233_s24 = smov [#allocation11]  }
  0x6a   : > { %v464_v14 = vmax.f32 %v460_v10, %v461_v11  ;;  %v1429_v17 = vsel %vm456_vm0, 1.0, %v1232_v16  ;;  %v465_v18 = vmax.f32 %v462_v12, %v463_v13  ;;  %p1082_p11 = pnand %p1081_p8, %p1616_p0  ;;  %s1084_s25 = sshll.u32 %s1233_s24, 4  ;;  %s1085_s25 = int_to_ptr.vmem [resolvable:$false] %s1084_s25 }
  0x6b   : > { %v1432_v23 = vmul.f32 %v917_v20, %v1429_v17  ;;  %v1435_v24 = vmul.f32 %v918_v21, %v1429_v17  ;;  %v1438_v25 = vmul.f32 %v919_v22, %v1429_v17  ;;  %v542_v37 = vmul.f32 %v920_v26, %v1429_v17  ;;  %p1087_p7 = scmp.lt.s32.totalorder %s1474_s8, %s1085_s25 }
  0x6c   : > { %v466_v19 = vmax.f32 %v464_v14, %v465_v18  ;;  %p1083_p4 = pneg %p1082_p11 }
  0x6d   : > { %v640_v31 = vrot.slane %v1432_v23, 4  ;;  %v646_v32 = vrot.slane %v1435_v24, 4  ;;  %v652_v33 = vrot.slane %v1438_v25, 4  ;;  %v658_v42 = vrot.slane %v542_v37, 4 }
  0x6e   : > { %v467_v27 = vsub.f32 %v460_v10, %v466_v19  ;;  %v468_v28 = vsub.f32 %v461_v11, %v466_v19  ;;  %v469_v29 = vsub.f32 %v462_v12, %v466_v19  ;;  %v470_v30 = vsub.f32 %v463_v13, %v466_v19 }
  0x6f   : > { %v641_v39 = vadd.f32 %v640_v31, %v1432_v23  ;;  %v647_v40 = vadd.f32 %v646_v32, %v1435_v24  ;;  %v653_v41 = vadd.f32 %v652_v33, %v1438_v25  ;;  %v659_v46 = vadd.f32 %v658_v42, %v542_v37 }
  0x70   : > { %v471_v34 = vmul.f32 1.442695, %v467_v27  ;;  %v473_v35 = vmul.f32 1.442695, %v468_v28  ;;  %v475_v36 = vmul.f32 1.442695, %v469_v29 }
  0x71   : > { %v477_v38 = vmul.f32 1.442695, %v470_v30  ;;  %v642_v43 = vrot.slane %v641_v39, 2  ;;  %v648_v44 = vrot.slane %v647_v40, 2  ;;  %v654_v45 = vrot.slane %v653_v41, 2 }
  0x72   : > { %1010 = vpow2.f32 %v471_v34  ;;  %v660_v50 = vrot.slane %v659_v46, 2 }
  0x73   : > { %1012 = vpow2.f32 %v473_v35  ;;  %v643_v47 = vadd.f32 %v642_v43, %v641_v39  ;;  %v649_v48 = vadd.f32 %v648_v44, %v647_v40  ;;  %v655_v49 = vadd.f32 %v654_v45, %v653_v41 }
  0x74   : > { %1014 = vpow2.f32 %v475_v36  ;;  %v661_v54 = vadd.f32 %v660_v50, %v659_v46 }
  0x75   : > { %1016 = vpow2.f32 %v477_v38  ;;  %v644_v51 = vrot.slane %v643_v47, 1  ;;  %v650_v52 = vrot.slane %v649_v48, 1  ;;  %v656_v53 = vrot.slane %v655_v49, 1 }
  0x76   : > { %v662_v58 = vrot.slane %v661_v54, 1 }
  0x77   : > { %v645_v55 = vadd.f32 %v644_v51, %v643_v47  ;;  %v651_v56 = vadd.f32 %v650_v52, %v649_v48  ;;  %v657_v57 = vadd.f32 %v656_v53, %v655_v49 }
  0x78   : > { %v663_v61 = vadd.f32 %v662_v58, %v661_v54 }
  0x79   : > { %v668_v59 = vsel %vm591_vm5, %v651_v56, %v645_v55 }
  0x7a   : > { %v669_v62 = vsel %vm593_vm6, %v657_v57, %v668_v59 }
  0x7b   : > { %v670_v2 = vsel %vm595_vm7, %v663_v61, %v669_v62 }
  0x7c   : > { %v1011_v60 = vpop.eup %1010  ;;  %672 = vst [vmem:[%s319_s6] sm:$0xf] %v670_v2  ;;  %s1498_s6 = scalar_lea.hbm %s1599_s2, %s924_s7 }
  0x7d   : > { %v1013_v63 = vpop.eup %1012 }
  0x7e   : > { %v1015_v0 = vpop.eup %1014  ;;  %v479_v1 = vadd.f32 %v1013_v63, %v1011_v60 }
  0x7f   : > { %v1017_v3 = vpop.eup %1016 }
  0x80   : > { %v480_v4 = vadd.f32 %v1015_v0, %v479_v1 }
  0x82   : > { %v481_v5 = vadd.f32 %v1017_v3, %v480_v4 }
  0x84   : > { %1018 = vrcp.f32 %v481_v5 }
  0x8e   : > { %v1019_v6 = vpop.eup %1018 }
  0x8f   : > { %v483_v7 = vmul.f32 %v1019_v6, %v1011_v60  ;;  %v484_v8 = vmul.f32 %v1019_v6, %v1013_v63  ;;  %v485_v9 = vmul.f32 %v1019_v6, %v1015_v0  ;;  %v486_v10 = vmul.f32 %v1019_v6, %v1017_v3 }
  0x91   : > { %v490_v11 = vmul.f32 %v1429_v17, %v483_v7  ;;  %v505_v12 = vmul.f32 %v1429_v17, %v484_v8  ;;  %v523_v13 = vmul.f32 %v1429_v17, %v485_v9  ;;  %v541_v14 = vmul.f32 %v1429_v17, %v486_v10 }
  0x93   : > { %v603_v15 = vrot.slane %v490_v11, 4  ;;  %v609_v16 = vrot.slane %v505_v12, 4  ;;  %v615_v18 = vrot.slane %v523_v13, 4  ;;  %v621_v19 = vrot.slane %v541_v14, 4 }
  0x94   : > { %v493_v20 = vmul.f32 %v1432_v23, %v490_v11  ;;  %v509_v21 = vmul.f32 %v1435_v24, %v505_v12  ;;  %v527_v22 = vmul.f32 %v1438_v25, %v523_v13  ;;  %v545_v26 = vmul.f32 %v542_v37, %v541_v14 }
  0x95   : > { %v604_v27 = vadd.f32 %v603_v15, %v490_v11  ;;  %v610_v28 = vadd.f32 %v609_v16, %v505_v12  ;;  %v616_v29 = vadd.f32 %v615_v18, %v523_v13  ;;  %v622_v30 = vadd.f32 %v621_v19, %v541_v14 }
  0x96   : > { %v563_v31 = vrot.slane %v493_v20, 4  ;;  %v569_v32 = vrot.slane %v509_v21, 4  ;;  %v575_v33 = vrot.slane %v527_v22, 4  ;;  %v581_v34 = vrot.slane %v545_v26, 4 }
  0x97   : > { %v605_v17 = vrot.slane %v604_v27, 2  ;;  %v611_v35 = vrot.slane %v610_v28, 2  ;;  %v617_v36 = vrot.slane %v616_v29, 2  ;;  %v623_v38 = vrot.slane %v622_v30, 2 }
  0x98   : > { %v564_v39 = vadd.f32 %v563_v31, %v493_v20  ;;  %v570_v23 = vadd.f32 %v569_v32, %v509_v21  ;;  %v576_v24 = vadd.f32 %v575_v33, %v527_v22  ;;  %v582_v40 = vadd.f32 %v581_v34, %v545_v26 }
  0x99   : > { %v606_v25 = vadd.f32 %v605_v17, %v604_v27  ;;  %v612_v37 = vadd.f32 %v611_v35, %v610_v28  ;;  %v618_v41 = vadd.f32 %v617_v36, %v616_v29  ;;  %v624_v42 = vadd.f32 %v623_v38, %v622_v30 }
  0x9a   : > { %v565_v43 = vrot.slane %v564_v39, 2  ;;  %v571_v44 = vrot.slane %v570_v23, 2  ;;  %v577_v45 = vrot.slane %v576_v24, 2  ;;  %v583_v46 = vrot.slane %v582_v40, 2 }
  0x9b   : > { %v607_v47 = vrot.slane %v606_v25, 1  ;;  %v613_v48 = vrot.slane %v612_v37, 1  ;;  %v619_v49 = vrot.slane %v618_v41, 1  ;;  %v625_v50 = vrot.slane %v624_v42, 1 }
  0x9c   : > { %v566_v51 = vadd.f32 %v565_v43, %v564_v39  ;;  %v572_v52 = vadd.f32 %v571_v44, %v570_v23  ;;  %v578_v53 = vadd.f32 %v577_v45, %v576_v24  ;;  %v584_v54 = vadd.f32 %v583_v46, %v582_v40 }
  0x9d   : > { %v608_v55 = vadd.f32 %v607_v47, %v606_v25  ;;  %v614_v56 = vadd.f32 %v613_v48, %v612_v37  ;;  %v620_v57 = vadd.f32 %v619_v49, %v618_v41  ;;  %v626_v58 = vadd.f32 %v625_v50, %v624_v42 }
  0x9e   : > { %v567_v59 = vrot.slane %v566_v51, 1  ;;  %v573_v60 = vrot.slane %v572_v52, 1  ;;  %v579_v61 = vrot.slane %v578_v53, 1  ;;  %v585_v62 = vrot.slane %v584_v54, 1 }
  0x9f   : > { %v631_v63 = vsel %vm591_vm5, %v614_v56, %v608_v55 }
  0xa0   : > { %v632_v0 = vsel %vm593_vm6, %v620_v57, %v631_v63  ;;  %v568_v1 = vadd.f32 %v567_v59, %v566_v51  ;;  %v574_v2 = vadd.f32 %v573_v60, %v572_v52  ;;  %v580_v3 = vadd.f32 %v579_v61, %v578_v53 }
  0xa1   : > { %v633_v4 = vsel %vm595_vm7, %v626_v58, %v632_v0  ;;  %v586_v5 = vadd.f32 %v585_v62, %v584_v54 }
  0xa2   : > { %635 = vst [vmem:[%s312_s10] sm:$0xf] %v633_v4  ;;  %v592_v6 = vsel %vm591_vm5, %v574_v2, %v568_v1  ;;  %s1086_s10 = scalar_lea.vmem %s1085_s25, 128 }
  0xa3   : > { %v594_v7 = vsel %vm593_vm6, %v580_v3, %v592_v6  ;;  %p1088_p10 = scmp.lt.s32.totalorder %s1086_s10, %s1080_s21 }
  0xa5   : > { %p1089_p12 = por %p1088_p10, %p1087_p7 }
  0xa7   : > { %p1090_p9 = pnand %p1089_p12, %p1083_p4 }
  0xa9   : > { %1093 = shalt.err (!%p1090_p9)
}
  0xaa   : > { %s1094_s5 = scalar_lea.hbm %s1482_s14, 64  ;;  %s1098_s9 = scalar_lea.hbm %s1600_s3, 128 }
  0xab   : > { %p1095_p1 = scmp.ne.s32.totalorder %s1482_s14, %s1094_s5  ;;  %p1099_p5 = scmp.lt.u32.totalorder %s1482_s14, %s1600_s3 }
  0xac   : > { %p1100_p13 = scmp.lt.u32.totalorder %s1098_s9, %s1094_s5  ;;  %p1102_p8 = scmp.lt.u32.totalorder %s1094_s5, %s1482_s14 }
  0xad   : > { %p1096_p6 = pnand %p1095_p1, %p1616_p0 }
  0xae   : > { %p1101_p3 = por %p1100_p13, %p1099_p5 }
  0xaf   : > { %p1097_p2 = pneg %p1096_p6 }
  0xb0   : > { %p1103_p11 = por %p1102_p8, %p1101_p3 }
  0xb2   : > { %p1104_p4 = pnand %p1103_p11, %p1097_p2 }
  0xb4   : > { %1107 = shalt.err (!%p1104_p4)
}
  0xb5   : > { %935 = dma.vmem_to_hbm [thread:$0]  (%p1616_p0), %s1474_s8, 64, %s1482_s14, %s1501_s18   ;;  %v596_v8 = vsel %vm595_vm7, %v586_v5, %v594_v7 }
  0xb6   : > { %s1108_s21 = scalar_lea.vmem %s1485_s26, 64  ;;  %s1234_s10 = smov [#allocation13]  }
  0xb7   : > { %p1109_p7 = scmp.ne.s32.totalorder %s1485_s26, %s1108_s21  ;;  %s1112_s5 = sshll.u32 %s1234_s10, 4  ;;  %s1113_s5 = int_to_ptr.vmem [resolvable:$false] %s1112_s5 }
  0xb8   : > { %s1114_s7 = scalar_lea.vmem %s1113_s5, 128  ;;  %p1115_p9 = scmp.lt.s32.totalorder %s1485_s26, %s1113_s5 }
  0xb9   : > { %p1110_p10 = pnand %p1109_p7, %p1616_p0  ;;  %p1116_p1 = scmp.lt.s32.totalorder %s1114_s7, %s1108_s21 }
  0xbb   : > { %p1111_p12 = pneg %p1110_p10  ;;  %p1117_p6 = por %p1116_p1, %p1115_p9 }
  0xbd   : > { %p1118_p2 = pnand %p1117_p6, %p1111_p12 }
  0xbf   : > { %1121 = shalt.err (!%p1118_p2)
}
  0xc0   : > { %s1122_s8 = scalar_lea.hbm %s1490_s0, 64  ;;  %s1126_s9 = scalar_lea.hbm %s1601_s4, 128 }
  0xc1   : > { %p1123_p5 = scmp.ne.s32.totalorder %s1490_s0, %s1122_s8  ;;  %p1127_p8 = scmp.lt.u32.totalorder %s1490_s0, %s1601_s4 }
  0xc2   : > { %p1128_p11 = scmp.lt.u32.totalorder %s1126_s9, %s1122_s8  ;;  %p1130_p7 = scmp.lt.u32.totalorder %s1122_s8, %s1490_s0 }
  0xc3   : > { %p1124_p13 = pnand %p1123_p5, %p1616_p0 }
  0xc4   : > { %p1129_p4 = por %p1128_p11, %p1127_p8 }
  0xc5   : > { %p1125_p3 = pneg %p1124_p13 }
  0xc6   : > { %p1131_p10 = por %p1130_p7, %p1129_p4 }
  0xc8   : > { %p1132_p12 = pnand %p1131_p10, %p1125_p3 }
  0xca   : > { %1135 = shalt.err (!%p1132_p12)
}
  0xcb   : > { %936 = dma.vmem_to_hbm [thread:$0]  (%p1616_p0), %s1485_s26, 64, %s1490_s0, %s1501_s18   ;;  %598 = vst [vmem:[%s305_s11] sm:$0xf] %v596_v8 }
  0xcc   : > { %s674_s21 = scalar_lea.sflag [#allocation7], %s1415_s12  ;;  %s1136_s10 = scalar_lea.vmem %s1476_s22, 64 }
  0xcd   : > { %p1137_p9 = scmp.ne.s32.totalorder %s1476_s22, %s1136_s10  ;;  %s1235_s5 = smov [#allocation10]  }
  0xce   : > { %s1140_s7 = sshll.u32 %s1235_s5, 4  ;;  %s1141_s7 = int_to_ptr.vmem [resolvable:$false] %s1140_s7 }
  0xcf   : > { %p1138_p1 = pnand %p1137_p9, %p1616_p0  ;;  %s1142_s8 = scalar_lea.vmem %s1141_s7, 128 }
  0xd0   : > { %p1143_p2 = scmp.lt.s32.totalorder %s1476_s22, %s1141_s7  ;;  %p1144_p5 = scmp.lt.s32.totalorder %s1142_s8, %s1136_s10 }
  0xd1   : > { %p1139_p6 = pneg %p1138_p1 }
  0xd2   : > { %p1145_p13 = por %p1144_p5, %p1143_p2 }
  0xd4   : > { %p1146_p3 = pnand %p1145_p13, %p1139_p6 }
  0xd6   : > { %1149 = shalt.err (!%p1146_p3)
}
  0xd7   : > { %s1150_s12 = scalar_lea.hbm %s1498_s6, 64  ;;  %s1154_s26 = scalar_lea.hbm %s1599_s2, 128 }
  0xd8   : > { %p1151_p8 = scmp.ne.s32.totalorder %s1498_s6, %s1150_s12  ;;  %p1155_p7 = scmp.lt.u32.totalorder %s1498_s6, %s1599_s2 }
  0xd9   : > { %p1156_p10 = scmp.lt.u32.totalorder %s1154_s26, %s1150_s12  ;;  %p1158_p9 = scmp.lt.u32.totalorder %s1150_s12, %s1498_s6 }
  0xda   : > { %p1152_p11 = pnand %p1151_p8, %p1616_p0 }
  0xdb   : > { %p1157_p12 = por %p1156_p10, %p1155_p7 }
  0xdc   : > { %p1153_p4 = pneg %p1152_p11 }
  0xdd   : > { %p1159_p1 = por %p1158_p9, %p1157_p12 }
  0xdf   : > { %p1160_p6 = pnand %p1159_p1, %p1153_p4 }
  0xe1   : > { %1163 = shalt.err (!%p1160_p6)
}
  0xe2   : > { %934 = dma.vmem_to_hbm [thread:$0]  (%p1616_p0), %s1476_s22, 64, %s1498_s6, %s674_s21  }
  0xe3 PF: > { %s738_s14 = sand.u32 1, %s1206_s15   ;;  %p1617_p2 = scmp.ne.s32.totalorder %s1609_s30, 0 }
  0xe4   : > { %p1618_p5 = scmp.ge.s32.totalorder %s1226_s20, 2  ;;  %s739_s13 = scalar_lea.sflag [#allocation7], %s738_s14 }
  0xe6   : > { %p948_p13 = pnand %p1618_p5, %p1617_p2 }
  0xe8   : > { %1197 = dma.done.wait (!%p948_p13), %s739_s13, 64  }
  0xe9   : > { %1199 = vsyncadd (!%p948_p13), %s739_s13, 4294967232  ;;  %s1619_s9 = sadd.s32 4294967294, %s1226_s20  }
  0xea   : > { %s747_s24 = sand.u32 1, %s1619_s9  }
  0xeb   : > { %s748_s25 = scalar_lea.sflag [#allocation12], %s747_s24 }
  0xec   : > { %1201 = dma.done.wait (!%p948_p13), %s748_s25, 128  }
  0xed   : > { %1203 = vsyncadd (!%p948_p13), %s748_s25, 4294967168  ;;  %s27_s20 = sadd.s32 1, %s1226_s20   ;;  %s1620_s15 = smov %s1210_s16 }
  0xee   : > { %p24_p0 = scmp.ge.s32.totalorder %s27_s20, 4   ;;  %s1621_s16 = smov %s1214_s17 }
  0xef   : > { %s1622_s17 = smov %s1323_s29  ;;  %s1623_s18 = smov %s1222_s19 }
  0xf0   : > { %s1624_s19 = smov %s1626_s23  ;;  %26 = sbr.rel (!%p24_p0) target bundleno = 12 (0xc), region = 152 }
  0xf7   :  { %762 = vsyncpa [#allocation6], 1 }
  0xf8   :  { %764 = vsyncpa [#allocation6 + $0x1], 1 }
  0xf9   :  { %765 = vsyncpa [#allocation9], 1 }
  0xfa   :  { %767 = vsyncpa [#allocation9 + $0x1], 1 }
  0xfb   :  { %768 = vsyncpa [#allocation7], 1 }
  0xfc   :  { %770 = vsyncpa [#allocation7 + $0x1], 1 }
  0xfd   :  { %771 = vsyncpa [#allocation12], 1 }
  0xfe   :  { %773 = vsyncpa [#allocation12 + $0x1], 1 }

</bundles_post_ra>
